<compile_context>
chip_gen: v5e
topology: v5e:2x2
jax: 0.10.0
libtpu: 0.0.40
codegen_flags: <defaults>
</compile_context>

<pallas_src>
import jax
import jax.numpy as jnp
from jax.experimental import pallas as pl
from jax.experimental.pallas import tpu as pltpu


# --------------------------------------------------------------------------- #
# Kernel
# --------------------------------------------------------------------------- #
def make_cnn_kernel(filter_sizes, SLAB, y_dtype, approx_recip):
    n_fs = len(filter_sizes)
    slab_base = []
    s = 0
    for fs in filter_sizes:
        slab_base.append(s)
        s += fs
    n_slabs = s
    c_pad = n_slabs * SLAB

    def kernel(x_ref, wall_ref, convb_ref, fc1w_ref, fc1b_ref,
               fc2w_ref, fc2b_ref, out_ref):
        x = x_ref[...]                                   # (B_t, L, E) storage dtype
        B_t, L, E = x.shape

        # ---- one MXU matmul covering every (filter, shift) pair ----------------
        y = jnp.dot(x.reshape(B_t * L, E), wall_ref[...],
                    preferred_element_type=jnp.float32)  # (B_t*L, c_pad) f32
        y3 = y.reshape(B_t, L, c_pad).astype(y_dtype)    # bf16 on v6e/v7x, f32 on v5e

        # ---- per-filter: lane-aligned shifted-slice sum -> +bias -> ReLU -> pool
        pooled_slabs = []
        for idx, fs in enumerate(filter_sizes):
            l_out = L - fs + 1
            c0 = slab_base[idx] * SLAB
            acc = y3[:, 0:l_out, c0:c0 + SLAB]
            for i in range(1, fs):
                acc = acc + y3[:, i:i + l_out, c0 + i * SLAB:c0 + (i + 1) * SLAB]
            b = convb_ref[idx:idx + 1, :].reshape(1, 1, SLAB).astype(acc.dtype)
            acc = jnp.maximum(acc + b, 0.0)              # conv bias + ReLU
            # avg_pool1d over the full temporal extent (accumulate in f32)
            pooled = jnp.sum(acc, axis=1, dtype=jnp.float32) * (1.0 / l_out)
            pooled_slabs.append(pooled)                  # (B_t, SLAB); pad lanes == 0

        # lane-dense concat -> single fc1 matmul (padded rows of fc1w are zero)
        pooled_cat = jnp.concatenate(pooled_slabs, axis=1)   # (B_t, n_fs*SLAB) f32
        h = jnp.dot(pooled_cat, fc1w_ref[...], preferred_element_type=jnp.float32)
        h = jnp.maximum(h + fc1b_ref[...], 0.0)          # fc1 bias; dropout = identity (eval)

        # fc2 (eval-mode BatchNorm pre-folded; padded output lanes have bias -1e30)
        logits = jnp.dot(h, fc2w_ref[...],
                         preferred_element_type=jnp.float32) + fc2b_ref[...]

        # softmax over dim=1 (padded lanes contribute exact zeros)
        m = jnp.max(logits, axis=1, keepdims=True)
        e = jnp.exp(logits - m)
        denom = jnp.sum(e, axis=1, keepdims=True)
        out_ref[...] = (e * pl.reciprocal(denom, approx=approx_recip)).astype(out_ref.dtype)

    return kernel


# --------------------------------------------------------------------------- #
# Host-side helpers
# --------------------------------------------------------------------------- #
def _round_up(n, m):
    return ((n + m - 1) // m) * m


def _tpu_config():
    """Per-generation (vmem_budget_bytes, use_bf16_y3, want_even_grid)."""
    kind = ""
    try:
        kind = jax.devices()[0].device_kind.lower()
    except Exception:
        pass
    is_v7 = ("7x" in kind) or ("v7" in kind)
    is_v6 = "v6" in kind
    known_128mib = is_v6 or ("v5" in kind) or ("v4" in kind)
    if is_v7:
        vmem_budget = 40 * 2 ** 20            # 64 MiB physical -> ~40 MiB budget
    elif known_128mib:
        vmem_budget = 96 * 2 ** 20            # 128 MiB physical -> ~96 MiB budget
    else:
        vmem_budget = 48 * 2 ** 20            # conservative fallback
        try:
            cap = pltpu.get_tpu_info().vmem_capacity_bytes
            vmem_budget = max(int(cap) - 24 * 2 ** 20, 16 * 2 ** 20)
        except Exception:
            pass
    use_bf16_y3 = is_v6 or is_v7              # v5e has no bf16 VPU -> keep f32
    want_even_grid = is_v7                    # 2 TensorCores per chip
    return int(vmem_budget), use_bf16_y3, want_even_grid


def _estimate_vmem_bytes(L, E, c_pad, SLAB, n_fs, H_pad, OUT_PAD,
                         x_bytes, w_bytes, y_bytes, x_buffers):
    """Rough (per_row_bytes, fixed_bytes) VMEM model for the tile picker."""
    lane = lambda n: _round_up(n, 128)
    sub = lambda n: _round_up(n, 8)
    L8 = sub(L)
    per_row = (
        L8 * lane(E) * x_bytes * x_buffers                    # pipelined x tile
        + L8 * c_pad * 4                                      # f32 matmul result y
        + (L8 * c_pad * y_bytes if y_bytes != 4 else 0)       # bf16 copy of y3
        + 3 * L8 * SLAB * y_bytes                             # acc / slice temporaries
        + n_fs * SLAB * 4                                     # pooled concat
        + (H_pad + 2 * OUT_PAD) * 4                           # h / logits / softmax temps
        + OUT_PAD * 4 * 2                                     # double-buffered output tile
    )
    fixed = (
        sub(E) * c_pad * w_bytes * 2                          # fused conv weights
        + sub(n_fs) * SLAB * 4 * 2                            # conv bias
        + (n_fs * SLAB) * H_pad * 4 * 2                       # fc1 weight
        + H_pad * 4 * 2 + OUT_PAD * 4 * 2                     # fc1 / fc2 bias
        + H_pad * OUT_PAD * 4 * 2                             # fc2 weight
        + 2 * 2 ** 20                                         # compiler scratch slack
    )
    return int(per_row), int(fixed)


def _pick_batch_tile(batch, per_row_bytes, fixed_bytes, vmem_budget,
                     requested=None, want_even_grid=False):
    """Largest VMEM-fitting rows-per-step; multiple of 8 (or full batch)."""
    if requested is not None and batch % requested == 0 and \
            (requested == batch or requested % 8 == 0):
        return requested
    if batch % 8 != 0:
        return batch                                           # single full-batch tile
    avail = vmem_budget - fixed_bytes
    max_rows = 8 if avail <= 0 else max(8, (avail // per_row_bytes) // 8 * 8)
    hi = int(min(batch, max_rows))
    cands = [c for c in range(8, hi + 1, 8) if batch % c == 0] or [8]
    if want_even_grid:
        even = [c for c in cands if (batch // c) % 2 == 0]     # >=2 even steps -> both TCs
        if even:
            return max(even)
    return max(cands)


def pack_cnn_params(params, filter_sizes, *, weight_dtype=jnp.bfloat16):
    """One-time weight packing: slab-padded fused conv weights, zero-padded fc1,
    eval-mode BatchNorm folded into fc2, lane-dense (-1e30-padded) fc2 bias."""
    eps = 1e-5
    NF = params["conv_w"][0].shape[0]
    E = params["conv_w"][0].shape[-1]
    n_fs = len(filter_sizes)
    H = params["fc1_w"].shape[0]
    out_dim = params["fc2_w"].shape[0]

    SLAB = _round_up(NF, 128)
    n_slabs = sum(filter_sizes)
    c_pad = n_slabs * SLAB
    H_pad = _round_up(H, 128)
    OUT_PAD = 128

    # ---- fused, slab-padded conv weights (each (filter, shift) slab lane-aligned)
    w_all = jnp.zeros((E, c_pad), jnp.float32)
    slab = 0
    for idx, fs in enumerate(filter_sizes):
        w = params["conv_w"][idx][:, 0, :, :]                  # (NF, fs, E)
        for i in range(fs):
            w_all = w_all.at[:, slab * SLAB:slab * SLAB + NF].set(w[:, i, :].T)
            slab += 1
    w_all = w_all.astype(weight_dtype)

    conv_b = jnp.zeros((n_fs, SLAB), jnp.float32)
    for idx in range(n_fs):
        conv_b = conv_b.at[idx, :NF].set(params["conv_b"][idx])

    # ---- fc1, zero-padded to slab layout so one matmul covers all filters -------
    fc1_wT = jnp.zeros((n_fs * SLAB, H_pad), jnp.float32)
    for idx in range(n_fs):
        fc1_wT = fc1_wT.at[idx * SLAB:idx * SLAB + NF, :H].set(
            params["fc1_w"][:, idx * NF:(idx + 1) * NF].T)
    fc1_b = jnp.zeros((1, H_pad), jnp.float32).at[0, :H].set(params["fc1_b"])

    # ---- fold eval-mode BatchNorm1d into fc2; pad output to 128 lanes -----------
    bn_scale = params["bn_gamma"] / jnp.sqrt(params["bn_var"] + eps)
    bn_bias = params["bn_beta"] - params["bn_mean"] * bn_scale
    fc2_wT = params["fc2_w"].T.astype(jnp.float32)             # (H, out_dim)
    fc2_wT_folded = bn_scale[:, None] * fc2_wT
    fc2_b_folded = bn_bias @ fc2_wT + params["fc2_b"]
    fc2_w = jnp.zeros((H_pad, OUT_PAD), jnp.float32).at[:H, :out_dim].set(fc2_wT_folded)
    fc2_b = jnp.full((1, OUT_PAD), -1e30, jnp.float32).at[0, :out_dim].set(fc2_b_folded)

    return {
        "w_all": w_all, "conv_b": conv_b, "fc1_wT": fc1_wT, "fc1_b": fc1_b,
        "fc2_w": fc2_w, "fc2_b": fc2_b,
        "meta": {"filter_sizes": tuple(filter_sizes), "NF": NF, "E": E,
                 "SLAB": SLAB, "c_pad": c_pad, "H_pad": H_pad,
                 "OUT_PAD": OUT_PAD, "out_dim": out_dim},
    }


def cnn_forward(embedded, packed, *, y_dtype=None, batch_tile=None,
                x_pipeline_depth=2, approx_softmax_recip=True):
    """Forward pass. `packed` comes from pack_cnn_params (hoisted, reusable)."""
    meta = packed["meta"]
    filter_sizes = meta["filter_sizes"]
    SLAB, c_pad = meta["SLAB"], meta["c_pad"]
    H_pad, OUT_PAD, out_dim = meta["H_pad"], meta["OUT_PAD"], meta["out_dim"]
    n_fs = len(filter_sizes)

    B, L, E = embedded.shape
    compute_dtype = packed["w_all"].dtype
    x = embedded.astype(compute_dtype)

    vmem_budget, bf16_y3, want_even_grid = _tpu_config()
    if y_dtype is None:
        y_dtype = jnp.bfloat16 if bf16_y3 else jnp.float32

    x_bytes = jnp.dtype(compute_dtype).itemsize
    y_bytes = jnp.dtype(y_dtype).itemsize
    per_row, fixed = _estimate_vmem_bytes(
        L, E, c_pad, SLAB, n_fs, H_pad, OUT_PAD,
        x_bytes=x_bytes, w_bytes=x_bytes, y_bytes=y_bytes,
        x_buffers=max(2, x_pipeline_depth))
    b_t = _pick_batch_tile(B, per_row, fixed, vmem_budget,
                           requested=batch_tile, want_even_grid=want_even_grid)
    grid = (B // b_t,)

    if x_pipeline_depth != 2:
        x_spec = pl.BlockSpec((b_t, L, E), lambda b: (b, 0, 0),
                              pipeline_mode=pl.Buffered(x_pipeline_depth))
    else:
        x_spec = pl.BlockSpec((b_t, L, E), lambda b: (b, 0, 0))

    kernel = make_cnn_kernel(filter_sizes, SLAB, y_dtype, approx_softmax_recip)

    out_padded = pl.pallas_call(
        kernel,
        out_shape=jax.ShapeDtypeStruct((B, OUT_PAD), jnp.float32),
        grid=grid,
        in_specs=[
            x_spec,                                              # x (pipelined)
            pl.BlockSpec((E, c_pad), lambda b: (0, 0)),          # fused conv weights
            pl.BlockSpec((n_fs, SLAB), lambda b: (0, 0)),        # conv biases (slab-padded)
            pl.BlockSpec((n_fs * SLAB, H_pad), lambda b: (0, 0)),  # fc1 weight (T, padded)
            pl.BlockSpec((1, H_pad), lambda b: (0, 0)),          # fc1 bias
            pl.BlockSpec((H_pad, OUT_PAD), lambda b: (0, 0)),    # fc2 weight (BN folded)
            pl.BlockSpec((1, OUT_PAD), lambda b: (0, 0)),        # fc2 bias (-1e30 padding)
        ],
        out_specs=pl.BlockSpec((b_t, OUT_PAD), lambda b: (b, 0)),
        compiler_params=pltpu.CompilerParams(
            dimension_semantics=("parallel",),
            vmem_limit_bytes=int(vmem_budget)),
    )(x, packed["w_all"], packed["conv_b"], packed["fc1_wT"], packed["fc1_b"],
      packed["fc2_w"], packed["fc2_b"])

    return out_padded[:, :out_dim]


# --------------------------------------------------------------------------- #
# Pure-JAX reference (mirrors the PyTorch forward, eval mode)
# --------------------------------------------------------------------------- #
def cnn_reference(embedded, params, filter_sizes):
    x = embedded.astype(jnp.float32)
    eps = 1e-5
    pooled = []
    for idx, fs in enumerate(filter_sizes):
        w = params["conv_w"][idx][:, 0, :, :]                   # (NF, fs, E)
        b = params["conv_b"][idx]
        l_out = x.shape[1] - fs + 1
        acc = jnp.zeros((x.shape[0], l_out, w.shape[0]), jnp.float32)
        for i in range(fs):
            acc = acc + jnp.einsum('ble,fe->blf', x[:, i:i + l_out, :], w[:, i, :])
        acc = jax.nn.relu(acc + b)
        pooled.append(jnp.mean(acc, axis=1))
    cat = jnp.concatenate(pooled, axis=1)
    h = jax.nn.relu(cat @ params["fc1_w"].T + params["fc1_b"])
    scale = params["bn_gamma"] / jnp.sqrt(params["bn_var"] + eps)
    h = (h - params["bn_mean"]) * scale + params["bn_beta"]
    logits = h @ params["fc2_w"].T + params["fc2_b"]
    return jax.nn.softmax(logits, axis=1)


# --------------------------------------------------------------------------- #
# Demo / self-test
# --------------------------------------------------------------------------- #
if __name__ == "__main__":
    # Small shapes consistent with the module.
    B, L, E = 16, 8, 32              # batch, seq_len, embed_dim (== `shape`)
    num_filters = 8
    filter_sizes = (2, 3, 4)
    hidden_dim = 32
    output_dim = 4

    key = jax.random.PRNGKey(0)
    keys = jax.random.split(key, 16)

    params = {
        "conv_w": [0.1 * jax.random.normal(keys[i], (num_filters, 1, fs, E), jnp.float32)
                   for i, fs in enumerate(filter_sizes)],
        "conv_b": [0.05 * jax.random.normal(keys[4 + i], (num_filters,), jnp.float32)
                   for i in range(len(filter_sizes))],
        "fc1_w": 0.1 * jax.random.normal(keys[8], (hidden_dim, len(filter_sizes) * num_filters),
                                         jnp.float32),
        "fc1_b": 0.05 * jax.random.normal(keys[9], (hidden_dim,), jnp.float32),
        "fc2_w": 0.1 * jax.random.normal(keys[10], (output_dim, hidden_dim), jnp.float32),
        "fc2_b": 0.05 * jax.random.normal(keys[11], (output_dim,), jnp.float32),
        # BatchNorm1d defaults (eval mode)
        "bn_gamma": jnp.ones((hidden_dim,), jnp.float32),
        "bn_beta": jnp.zeros((hidden_dim,), jnp.float32),
        "bn_mean": jnp.zeros((hidden_dim,), jnp.float32),
        "bn_var": jnp.ones((hidden_dim,), jnp.float32),
    }

    embedded = jax.random.normal(keys[12], (B, L, E), jnp.float32)
    ref = jax.block_until_ready(cnn_reference(embedded, params, filter_sizes))

    # 1) Default path: bf16 residency for x / conv weights, auto VMEM-aware tile,
    #    bf16 y3 only on v6e/v7x (auto-detected).  Weights packed once, reused.
    packed_bf16 = pack_cnn_params(params, filter_sizes, weight_dtype=jnp.bfloat16)
    out = jax.block_until_ready(cnn_forward(embedded, packed_bf16))
    assert out.shape == (B, output_dim)
    assert jnp.allclose(out, ref, rtol=5e-2, atol=5e-2), (out, ref)

    # 2) Full-f32 accuracy path with exact softmax normalization.
    packed_f32 = pack_cnn_params(params, filter_sizes, weight_dtype=jnp.float32)
    out_f32 = jax.block_until_ready(
        cnn_forward(embedded, packed_f32, y_dtype=jnp.float32,
                    approx_softmax_recip=False))
    assert jnp.allclose(out_f32, ref, rtol=1e-3, atol=1e-3), (out_f32, ref)
    assert jnp.allclose(out_f32.sum(axis=1), 1.0, atol=1e-4)

    # 3) Explicit batch_tile=8 (2-step "parallel" grid), reusing packed weights.
    out_t8 = jax.block_until_ready(
        cnn_forward(embedded, packed_bf16, batch_tile=8))
    assert jnp.allclose(out_t8, ref, rtol=5e-2, atol=5e-2), (out_t8, ref)

    # 4) Tiny batch (B=2): full-batch tile, single grid step.
    out_small = jax.block_until_ready(cnn_forward(embedded[:2], packed_bf16))
    ref_small = jax.block_until_ready(cnn_reference(embedded[:2], params, filter_sizes))
    assert jnp.allclose(out_small, ref_small, rtol=5e-2, atol=5e-2), (out_small, ref_small)

    print("KERNEL_OK")
</pallas_src>

<mosaic_0001>
module attributes {stable_mosaic.version = 11 : i64} {
  func.func @kernel(%arg0: i32, %arg1: memref<16x8x32xbf16, #tpu.memory_space<vmem>>, %arg2: memref<32x1152xbf16, #tpu.memory_space<vmem>>, %arg3: memref<3x128xf32, #tpu.memory_space<vmem>>, %arg4: memref<384x128xf32, #tpu.memory_space<vmem>>, %arg5: memref<1x128xf32, #tpu.memory_space<vmem>>, %arg6: memref<128x128xf32, #tpu.memory_space<vmem>>, %arg7: memref<1x128xf32, #tpu.memory_space<vmem>>, %arg8: memref<16x128xf32, #tpu.memory_space<vmem>>) attributes {dimension_semantics = [#tpu.dimension_semantics<parallel>], iteration_bounds = array<i64: 1>, scalar_prefetch = 0 : i64, scratch_operands = 0 : i64, tpu.core_type = #tpu.core_type<tc>, window_params = [{transform_indices = @transform_0, window_bounds = array<i64: 16, 8, 32>}, {pipeline_mode = #tpu.pipeline_mode<synchronous>, transform_indices = @transform_1, window_bounds = array<i64: 32, 1152>}, {pipeline_mode = #tpu.pipeline_mode<synchronous>, transform_indices = @transform_2, window_bounds = array<i64: 3, 128>}, {pipeline_mode = #tpu.pipeline_mode<synchronous>, transform_indices = @transform_3, window_bounds = array<i64: 384, 128>}, {pipeline_mode = #tpu.pipeline_mode<synchronous>, transform_indices = @transform_4, window_bounds = array<i64: 1, 128>}, {pipeline_mode = #tpu.pipeline_mode<synchronous>, transform_indices = @transform_5, window_bounds = array<i64: 128, 128>}, {pipeline_mode = #tpu.pipeline_mode<synchronous>, transform_indices = @transform_6, window_bounds = array<i64: 1, 128>}, {transform_indices = @transform_7, window_bounds = array<i64: 16, 128>}]} {
    %c0 = arith.constant 0 : index
    %c0_0 = arith.constant 0 : index
    %c0_1 = arith.constant 0 : index
    %0 = vector.load %arg1[%c0, %c0_0, %c0_1] : memref<16x8x32xbf16, #tpu.memory_space<vmem>>, vector<16x8x32xbf16>
    %1 = vector.shape_cast %0 : vector<16x8x32xbf16> to vector<128x32xbf16>
    %c0_2 = arith.constant 0 : index
    %c0_3 = arith.constant 0 : index
    %2 = vector.load %arg2[%c0_2, %c0_3] : memref<32x1152xbf16, #tpu.memory_space<vmem>>, vector<32x1152xbf16>
    %cst = arith.constant dense<0.000000e+00> : vector<128x1152xf32>
    %3 = tpu.matmul %1, %2, %cst {dimension_numbers = #tpu.dot_dimension_numbers<[1], [0], [0], [1], [0, 0, 1, 1], [], []>} : vector<128x32xbf16>, vector<32x1152xbf16>, vector<128x1152xf32> -> vector<128x1152xf32>
    %4 = vector.shape_cast %3 : vector<128x1152xf32> to vector<16x8x1152xf32>
    %5 = vector.extract_strided_slice %4 {offsets = [0, 0, 0], sizes = [16, 7, 128], strides = [1, 1, 1]} : vector<16x8x1152xf32> to vector<16x7x128xf32>
    %6 = vector.extract_strided_slice %4 {offsets = [0, 1, 128], sizes = [16, 7, 128], strides = [1, 1, 1]} : vector<16x8x1152xf32> to vector<16x7x128xf32>
    %7 = arith.addf %5, %6 : vector<16x7x128xf32>
    %c0_4 = arith.constant 0 : index
    %c0_5 = arith.constant 0 : index
    %8 = vector.load %arg3[%c0_4, %c0_5] : memref<3x128xf32, #tpu.memory_space<vmem>>, vector<1x128xf32>
    %9 = vector.shape_cast %8 : vector<1x128xf32> to vector<1x1x128xf32>
    %10 = vector.broadcast %9 : vector<1x1x128xf32> to vector<16x7x128xf32>
    %11 = arith.addf %7, %10 : vector<16x7x128xf32>
    %cst_6 = arith.constant 0.000000e+00 : f32
    %12 = vector.broadcast %cst_6 : f32 to vector<16x7x128xf32>
    %13 = arith.maximumf %11, %12 : vector<16x7x128xf32>
    %cst_7 = arith.constant dense<0.000000e+00> : vector<16x128xf32>
    %14 = vector.multi_reduction <add>, %13, %cst_7 [1] : vector<16x7x128xf32> to vector<16x128xf32>
    %cst_8 = arith.constant 0.142857149 : f32
    %15 = vector.broadcast %cst_8 : f32 to vector<16x128xf32>
    %16 = arith.mulf %14, %15 : vector<16x128xf32>
    %17 = vector.extract_strided_slice %4 {offsets = [0, 0, 256], sizes = [16, 6, 128], strides = [1, 1, 1]} : vector<16x8x1152xf32> to vector<16x6x128xf32>
    %18 = vector.extract_strided_slice %4 {offsets = [0, 1, 384], sizes = [16, 6, 128], strides = [1, 1, 1]} : vector<16x8x1152xf32> to vector<16x6x128xf32>
    %19 = arith.addf %17, %18 : vector<16x6x128xf32>
    %20 = vector.extract_strided_slice %4 {offsets = [0, 2, 512], sizes = [16, 6, 128], strides = [1, 1, 1]} : vector<16x8x1152xf32> to vector<16x6x128xf32>
    %21 = arith.addf %19, %20 : vector<16x6x128xf32>
    %c1 = arith.constant 1 : index
    %c0_9 = arith.constant 0 : index
    %22 = vector.load %arg3[%c1, %c0_9] : memref<3x128xf32, #tpu.memory_space<vmem>>, vector<1x128xf32>
    %23 = vector.shape_cast %22 : vector<1x128xf32> to vector<1x1x128xf32>
    %24 = vector.broadcast %23 : vector<1x1x128xf32> to vector<16x6x128xf32>
    %25 = arith.addf %21, %24 : vector<16x6x128xf32>
    %cst_10 = arith.constant 0.000000e+00 : f32
    %26 = vector.broadcast %cst_10 : f32 to vector<16x6x128xf32>
    %27 = arith.maximumf %25, %26 : vector<16x6x128xf32>
    %cst_11 = arith.constant dense<0.000000e+00> : vector<16x128xf32>
    %28 = vector.multi_reduction <add>, %27, %cst_11 [1] : vector<16x6x128xf32> to vector<16x128xf32>
    %cst_12 = arith.constant 0.166666672 : f32
    %29 = vector.broadcast %cst_12 : f32 to vector<16x128xf32>
    %30 = arith.mulf %28, %29 : vector<16x128xf32>
    %31 = vector.extract_strided_slice %4 {offsets = [0, 0, 640], sizes = [16, 5, 128], strides = [1, 1, 1]} : vector<16x8x1152xf32> to vector<16x5x128xf32>
    %32 = vector.extract_strided_slice %4 {offsets = [0, 1, 768], sizes = [16, 5, 128], strides = [1, 1, 1]} : vector<16x8x1152xf32> to vector<16x5x128xf32>
    %33 = arith.addf %31, %32 : vector<16x5x128xf32>
    %34 = vector.extract_strided_slice %4 {offsets = [0, 2, 896], sizes = [16, 5, 128], strides = [1, 1, 1]} : vector<16x8x1152xf32> to vector<16x5x128xf32>
    %35 = arith.addf %33, %34 : vector<16x5x128xf32>
    %36 = vector.extract_strided_slice %4 {offsets = [0, 3, 1024], sizes = [16, 5, 128], strides = [1, 1, 1]} : vector<16x8x1152xf32> to vector<16x5x128xf32>
    %37 = arith.addf %35, %36 : vector<16x5x128xf32>
    %c2 = arith.constant 2 : index
    %c0_13 = arith.constant 0 : index
    %38 = vector.load %arg3[%c2, %c0_13] : memref<3x128xf32, #tpu.memory_space<vmem>>, vector<1x128xf32>
    %39 = vector.shape_cast %38 : vector<1x128xf32> to vector<1x1x128xf32>
    %40 = vector.broadcast %39 : vector<1x1x128xf32> to vector<16x5x128xf32>
    %41 = arith.addf %37, %40 : vector<16x5x128xf32>
    %cst_14 = arith.constant 0.000000e+00 : f32
    %42 = vector.broadcast %cst_14 : f32 to vector<16x5x128xf32>
    %43 = arith.maximumf %41, %42 : vector<16x5x128xf32>
    %cst_15 = arith.constant dense<0.000000e+00> : vector<16x128xf32>
    %44 = vector.multi_reduction <add>, %43, %cst_15 [1] : vector<16x5x128xf32> to vector<16x128xf32>
    %cst_16 = arith.constant 2.000000e-01 : f32
    %45 = vector.broadcast %cst_16 : f32 to vector<16x128xf32>
    %46 = arith.mulf %44, %45 : vector<16x128xf32>
    %47 = tpu.concatenate %16, %30, %46 in 1 : vector<16x128xf32>, vector<16x128xf32>, vector<16x128xf32> -> vector<16x384xf32>
    %c0_17 = arith.constant 0 : index
    %c0_18 = arith.constant 0 : index
    %48 = vector.load %arg4[%c0_17, %c0_18] : memref<384x128xf32, #tpu.memory_space<vmem>>, vector<384x128xf32>
    %cst_19 = arith.constant dense<0.000000e+00> : vector<16x128xf32>
    %49 = tpu.matmul %47, %48, %cst_19 {dimension_numbers = #tpu.dot_dimension_numbers<[1], [0], [0], [1], [0, 0, 1, 1], [], []>} : vector<16x384xf32>, vector<384x128xf32>, vector<16x128xf32> -> vector<16x128xf32>
    %c0_20 = arith.constant 0 : index
    %c0_21 = arith.constant 0 : index
    %50 = vector.load %arg5[%c0_20, %c0_21] : memref<1x128xf32, #tpu.memory_space<vmem>>, vector<1x128xf32>
    %51 = vector.broadcast %50 : vector<1x128xf32> to vector<16x128xf32>
    %52 = arith.addf %49, %51 : vector<16x128xf32>
    %cst_22 = arith.constant 0.000000e+00 : f32
    %53 = vector.broadcast %cst_22 : f32 to vector<16x128xf32>
    %54 = arith.maximumf %52, %53 : vector<16x128xf32>
    %c0_23 = arith.constant 0 : index
    %c0_24 = arith.constant 0 : index
    %55 = vector.load %arg6[%c0_23, %c0_24] : memref<128x128xf32, #tpu.memory_space<vmem>>, vector<128x128xf32>
    %cst_25 = arith.constant dense<0.000000e+00> : vector<16x128xf32>
    %56 = tpu.matmul %54, %55, %cst_25 {dimension_numbers = #tpu.dot_dimension_numbers<[1], [0], [0], [1], [0, 0, 1, 1], [], []>} : vector<16x128xf32>, vector<128x128xf32>, vector<16x128xf32> -> vector<16x128xf32>
    %c0_26 = arith.constant 0 : index
    %c0_27 = arith.constant 0 : index
    %57 = vector.load %arg7[%c0_26, %c0_27] : memref<1x128xf32, #tpu.memory_space<vmem>>, vector<1x128xf32>
    %58 = vector.broadcast %57 : vector<1x128xf32> to vector<16x128xf32>
    %59 = arith.addf %56, %58 : vector<16x128xf32>
    %cst_28 = arith.constant dense<0xFF800000> : vector<16xf32>
    %60 = vector.multi_reduction <maximumf>, %59, %cst_28 [1] : vector<16x128xf32> to vector<16xf32>
    %61 = vector.shape_cast %60 : vector<16xf32> to vector<16x1xf32>
    %62 = vector.broadcast %61 : vector<16x1xf32> to vector<16x128xf32>
    %63 = arith.subf %59, %62 : vector<16x128xf32>
    %64 = math.exp %63 : vector<16x128xf32>
    %cst_29 = arith.constant dense<0.000000e+00> : vector<16xf32>
    %65 = vector.multi_reduction <add>, %64, %cst_29 [1] : vector<16x128xf32> to vector<16xf32>
    %66 = vector.shape_cast %65 : vector<16xf32> to vector<16x1xf32>
    %67 = tpu.reciprocal %66 {approx = true} : vector<16x1xf32> -> vector<16x1xf32>
    %68 = vector.broadcast %67 : vector<16x1xf32> to vector<16x128xf32>
    %69 = arith.mulf %64, %68 : vector<16x128xf32>
    %c0_30 = arith.constant 0 : index
    %c0_31 = arith.constant 0 : index
    %70 = vector.load %arg8[%c0_30, %c0_31] : memref<16x128xf32, #tpu.memory_space<vmem>>, vector<16x128xf32>
    tpu.vector_store %arg8[%c0_30, %c0_31], %69 {strides = array<i32>} : memref<16x128xf32, #tpu.memory_space<vmem>>, vector<16x128xf32>,
    return
  }
  func.func @transform_0(%arg0: i32) -> (i32, i32, i32) {
    %c0_i32 = arith.constant 0 : i32
    %c0_i32_0 = arith.constant 0 : i32
    %c0_i32_1 = arith.constant 0 : i32
    return %arg0, %c0_i32, %c0_i32_0 : i32, i32, i32
  }
  func.func @transform_1(%arg0: i32) -> (i32, i32) {
    %c0_i32 = arith.constant 0 : i32
    %c0_i32_0 = arith.constant 0 : i32
    %c0_i32_1 = arith.constant 0 : i32
    return %c0_i32, %c0_i32_0 : i32, i32
  }
  func.func @transform_2(%arg0: i32) -> (i32, i32) {
    %c0_i32 = arith.constant 0 : i32
    %c0_i32_0 = arith.constant 0 : i32
    %c0_i32_1 = arith.constant 0 : i32
    return %c0_i32, %c0_i32_0 : i32, i32
  }
  func.func @transform_3(%arg0: i32) -> (i32, i32) {
    %c0_i32 = arith.constant 0 : i32
    %c0_i32_0 = arith.constant 0 : i32
    %c0_i32_1 = arith.constant 0 : i32
    return %c0_i32, %c0_i32_0 : i32, i32
  }
  func.func @transform_4(%arg0: i32) -> (i32, i32) {
    %c0_i32 = arith.constant 0 : i32
    %c0_i32_0 = arith.constant 0 : i32
    %c0_i32_1 = arith.constant 0 : i32
    return %c0_i32, %c0_i32_0 : i32, i32
  }
  func.func @transform_5(%arg0: i32) -> (i32, i32) {
    %c0_i32 = arith.constant 0 : i32
    %c0_i32_0 = arith.constant 0 : i32
    %c0_i32_1 = arith.constant 0 : i32
    return %c0_i32, %c0_i32_0 : i32, i32
  }
  func.func @transform_6(%arg0: i32) -> (i32, i32) {
    %c0_i32 = arith.constant 0 : i32
    %c0_i32_0 = arith.constant 0 : i32
    %c0_i32_1 = arith.constant 0 : i32
    return %c0_i32, %c0_i32_0 : i32, i32
  }
  func.func @transform_7(%arg0: i32) -> (i32, i32) {
    %c0_i32 = arith.constant 0 : i32
    %c0_i32_0 = arith.constant 0 : i32
    return %arg0, %c0_i32 : i32, i32
  }
}

</mosaic_0001>

<bundles_post_ra>
// kernel: tpu_custom_call.1
= control target key start
LH: loop header
LB: loop body
LE: loop exit
PB: predicated region body
PF: predicated region fallthrough
CT: control target
= control target key end

     0   :  { %12 = vsyncpa [#allocation3], 0  ;;  %s2871_s0 = inlined_call_operand.hbm [shape: bf16[16,8,32], index: 0, kind: input, shape index: {}]   ;;  %s2872_s1 = inlined_call_operand.hbm [shape: bf16[32,1152], index: 1, kind: input, shape index: {}]   ;;  %s2873_s2 = inlined_call_operand.hbm [shape: f32[3,128], index: 2, kind: input, shape index: {}]   ;;  %s2874_s3 = inlined_call_operand.hbm [shape: f32[384,128], index: 3, kind: input, shape index: {}]   ;;  %s2875_s4 = inlined_call_operand.vmem [shape: f32[1,128], index: 4, kind: input, shape index: {}]   ;;  %s2876_s5 = inlined_call_operand.hbm [shape: f32[128,128], index: 5, kind: input, shape index: {}]   ;;  %s2877_s6 = inlined_call_operand.vmem [shape: f32[1,128], index: 6, kind: input, shape index: {}]   ;;  %s2878_s7 = inlined_call_operand.hbm [shape: f32[16,128], index: 7, kind: output, shape index: {}]  }
   0x1   :  { %13 = vsyncpa [#allocation6], 0 }
   0x2   :  { %14 = vsyncpa [#allocation9], 0  ;;  %s33_s26 = sshll.u32 %s2872_s1, 4  ;;  %s34_s26 = int_to_ptr.hbm [resolvable:$true] %s33_s26 }
   0x3   :  { %15 = vsyncpa [#allocation4], 0  ;;  %s2308_s27 = smov [#allocation5]   ;;  %s57_s8 = sshll.u32 %s2874_s3, 4  ;;  %s58_s8 = int_to_ptr.hbm [resolvable:$true] %s57_s8 }
   0x4   :  { %s35_s28 = sshll.u32 %s2308_s27, 4  ;;  %s2309_s9 = smov 576   ;;  %s36_s28 = int_to_ptr.vmem [resolvable:$true] %s35_s28 }
   0x5   :  { %s2310_s10 = smov 36   ;;  %s2311_s11 = smov [#allocation8]  }
   0x6   :  { %41 = dma.hbm_to_vmem [thread:$0]  %s34_s26, 2304, %s36_s28, [#allocation6], %s2309_s9, %s2309_s9, %s2310_s10  }
   0x7   :  { %s59_s12 = sshll.u32 %s2311_s11, 4  ;;  %s2312_s13 = smov 128   ;;  %s60_s12 = int_to_ptr.vmem [resolvable:$true] %s59_s12 }
   0x8   :  { %s2313_s14 = smov 8   ;;  %s20_s16 = sshll.u32 %s2871_s0, 4  ;;  %s21_s16 = int_to_ptr.hbm [resolvable:$true] %s20_s16 }
   0x9   :  { %65 = dma.hbm_to_vmem [thread:$0]  %s58_s8, 6144, %s60_s12, [#allocation9], %s2312_s13, %s2312_s13, %s2313_s14  }
   0xa   :  { %s2314_s17 = smov [#allocation2]   ;;  %s47_s20 = sshll.u32 %s2873_s2, 4  ;;  %s48_s20 = int_to_ptr.hbm [resolvable:$true] %s47_s20 }
   0xb   :  { %s22_s3 = sshll.u32 %s2314_s17, 4  ;;  %s2315_s21 = smov 64   ;;  %s23_s3 = int_to_ptr.vmem [resolvable:$true] %s22_s3 }
   0xc   :  { %s2316_s22 = smov 4   ;;  %s2317_s23 = smov [#allocation7]  }
   0xd   :  { %28 = dma.hbm_to_vmem [thread:$0]  %s21_s16, 1024, %s23_s3, [#allocation3], %s2315_s21, %s2315_s21, %s2316_s22  }
   0xe   :  { %s49_s24 = sshll.u32 %s2317_s23, 4  ;;  %s72_s27 = sshll.u32 %s2876_s5, 4  ;;  %s50_s24 = int_to_ptr.vmem [resolvable:$true] %s49_s24  ;;  %s73_s27 = int_to_ptr.hbm [resolvable:$true] %s72_s27 }
   0xf   :  { %52 = dma.hbm_to_vmem [thread:$0]  %s48_s20, 64, %s50_s24, [#allocation6]  }
  0x10   :  { %s2318_s0 = smov [#allocation10]  }
  0x11   :  { %s74_s28 = sshll.u32 %s2318_s0, 4  ;;  %s75_s28 = int_to_ptr.vmem [resolvable:$true] %s74_s28 }
  0x12   :  { %80 = dma.hbm_to_vmem [thread:$0]  %s73_s27, 2048, %s75_s28, [#allocation9], %s2312_s13, %s2312_s13, %s2313_s14  }
  0x13   :  { %2300 = dma.done.wait [#allocation3], 1024  }
  0x14   :  { %2301 = vsyncadd [#allocation3], 4294966272 }
  0x15   :  { %2302 = dma.done.wait [#allocation6], 2368  }
  0x16   :  { %2303 = vsyncadd [#allocation6], 4294964928 }
  0x17   :  { %2304 = dma.done.wait [#allocation9], 8192  }
  0x18   :  { %2305 = vsyncadd [#allocation9], 4294959104  ;;  %v1991_v0 = vld [vmem:[#allocation5 + $0x48] sm:$0xf]  ;;  %v2118_v1 = vld [vmem:[#allocation5 + $0x68] sm:$0xf0] }
  0x19   :  { %v2114_v2 = vld [vmem:[#allocation5 + $0x4c] sm:$0xf]  ;;  %v1992_v3 = vor.u32 %v2118_v1, %v1991_v0  ;;  %v1993_v4 = vld [vmem:[#allocation5 + $0x6c] sm:$0xf0]  ;;  %v1955_v5 = vld [vmem:[#allocation5] sm:$0xf] }
  0x1a   :  { %v2109_v6 = vld [vmem:[#allocation5 + $0x20] sm:$0xf0]  ;;  %v1996_v7 = vor.u32 %v2114_v2, %v1993_v4  ;;  %v1957_v9 = vld [vmem:[#allocation5 + $0x24] sm:$0xf0]  ;;  %v2007_v11 = vld [vmem:[#allocation5 + $0x58] sm:$0xf] }
  0x1b   :  { %v2105_v8 = vld [vmem:[#allocation5 + $0x4] sm:$0xf]  ;;  %303 = vmatpush.bf16.msra.mxu0 %v1992_v3  ;;  %2123 = vmatpush.bf16.msra.mxu2 %v1992_v3  ;;  %v1956_v10 = vor.u32 %v2109_v6, %v1955_v5  ;;  %v2120_v13 = vld [vmem:[#allocation5 + $0x78] sm:$0xf0]  ;;  %v2115_v14 = vld [vmem:[#allocation5 + $0x54] sm:$0xf] }
  0x1c   :  { %2124 = vmatpush.bf16.msra.mxu3 %v1992_v3  ;;  %352 = vmatpush.bf16.msra.mxu1 %v1996_v7  ;;  %v1960_v12 = vor.u32 %v2105_v8, %v1957_v9  ;;  %v2001_v15 = vld [vmem:[#allocation5 + $0x74] sm:$0xf0]  ;;  %v2008_v16 = vor.u32 %v2120_v13, %v2007_v11  ;;  %v1999_v18 = vld [vmem:[#allocation5 + $0x50] sm:$0xf]  ;;  %v2119_v19 = vld [vmem:[#allocation5 + $0x70] sm:$0xf0] }
  0x1d   :  { %v2004_v17 = vor.u32 %v2115_v14, %v2001_v15  ;;  %v2381_v20 = vld [vmem:[#allocation2] sm:$0xff]  ;;  %vm272_vm0 = vcmask 261120   ;;  %v2385_v22 = vld [vmem:[#allocation2 + $0x28] sm:$0xff]  ;;  %v2000_v23 = vor.u32 %v2119_v19, %v1999_v18  ;;  %v1965_v27 = vld [vmem:[#allocation5 + $0x2c] sm:$0xf0]  ;;  %vm836_vm1 = vcmask 1046528  }
  0x1e   :  { %v2383_v21 = vld [vmem:[#allocation2 + $0x20] sm:$0xff]  ;;  %v1963_v24 = vld [vmem:[#allocation5 + $0x8] sm:$0xf]  ;;  %v2110_v25 = vld [vmem:[#allocation5 + $0x28] sm:$0xf0]  ;;  %vm1627_vm2 = vcmask 1041409  }
  0x1f   :  { %304 = vmatpush.bf16.msra.mxu0 %v1956_v10  ;;  %2125 = vmatpush.bf16.msra.mxu2 %v1956_v10  ;;  %v2106_v26 = vld [vmem:[#allocation5 + $0xc] sm:$0xf]  ;;  %v1971_v28 = vld [vmem:[#allocation5 + $0x10] sm:$0xf]  ;;  %v1964_v29 = vor.u32 %v2110_v25, %v1963_v24  ;;  %v2111_v31 = vld [vmem:[#allocation5 + $0x30] sm:$0xf0] }
  0x20   :  { %2126 = vmatpush.bf16.msra.mxu3 %v1956_v10  ;;  %353 = vmatpush.bf16.msra.mxu1 %v1960_v12  ;;  %v1968_v30 = vor.u32 %v2106_v26, %v1965_v27  ;;  %v1972_v32 = vor.u32 %v2111_v31, %v1971_v28  ;;  %v2395_v33 = vld [vmem:[#allocation2 + $0x8] sm:$0xff]  ;;  %v2397_v34 = vld [vmem:[#allocation2 + $0x30] sm:$0xff]  ;;  %v2015_v35 = vld [vmem:[#allocation5 + $0x60] sm:$0xf]  ;;  %vm1629_vm3 = vcmask 1042434   ;;  %vm1631_vm4 = vcmask 1043459  }
  0x21   :  { %v2121_v36 = vld [vmem:[#allocation5 + $0x80] sm:$0xf0]  ;;  %v2017_v39 = vld [vmem:[#allocation5 + $0x84] sm:$0xf0]  ;;  %v2116_v40 = vld [vmem:[#allocation5 + $0x5c] sm:$0xf] }
  0x22   :  { %2025 = vmatmul.msk.bf16.vlgmr.msra.gmra.mxu0 %vm272_vm0, %v2381_v20  ;;  %2029 = vmatmul.msk.bf16.vlgmr.msra.gmra.mxu2 %vm272_vm0, %v2383_v21  ;;  %v2117_v37 = vld [vmem:[#allocation5 + $0x64] sm:$0xf]  ;;  %v2016_v38 = vor.u32 %v2121_v36, %v2015_v35  ;;  %v2009_v41 = vld [vmem:[#allocation5 + $0x7c] sm:$0xf0]  ;;  %v2407_v44 = vld [vmem:[#allocation2 + $0x10] sm:$0xff]  ;;  %vm1633_vm5 = vcmask 1044484  }
  0x23   :  { %499 = vmatpush.bf16.msrb.mxu0 %v2008_v16  ;;  %2030 = vmatmul.msk.bf16.vlgmr.msra.gmra.mxu3 %vm272_vm0, %v2385_v22  ;;  %v2020_v42 = vor.u32 %v2117_v37, %v2017_v39  ;;  %v2012_v43 = vor.u32 %v2116_v40, %v2009_v41  ;;  %v2409_v45 = vld [vmem:[#allocation2 + $0x38] sm:$0xff]  ;;  %v2023_v46 = vld [vmem:[#allocation5 + $0x68] sm:$0xf]  ;;  %v2122_v47 = vld [vmem:[#allocation5 + $0x88] sm:$0xf0]  ;;  %vm1635_vm6 = vcmask 1045509  }
  0x24   :  { %450 = vmatpush.bf16.msrb.mxu3 %v2004_v17  ;;  %2033 = vmatmul.msk.bf16.vlgmr.msra.gmra.mxu1 %vm272_vm0, %v2381_v20  ;;  %v2024_v48 = vor.u32 %v2122_v47, %v2023_v46  ;;  %v2419_v49 = vld [vmem:[#allocation2 + $0x18] sm:$0xff]  ;;  %v1981_v54 = vld [vmem:[#allocation5 + $0x3c] sm:$0xf0]  ;;  %v2107_v56 = vld [vmem:[#allocation5 + $0x14] sm:$0xf]  ;;  %vm1127_vm7 = vcmask 1045504  }
  0x25   :  { %401 = vmatpush.bf16.msrb.mxu2 %v2000_v23  ;;  %548 = vmatpush.bf16.msrb.mxu1 %v2012_v43  ;;  %v1979_v50 = vld [vmem:[#allocation5 + $0x18] sm:$0xf]  ;;  %v2112_v51 = vld [vmem:[#allocation5 + $0x38] sm:$0xf0]  ;;  %v1987_v59 = vld [vmem:[#allocation5 + $0x20] sm:$0xf] }
  0x26   :  { %v2108_v52 = vld [vmem:[#allocation5 + $0x1c] sm:$0xf]  ;;  %v1980_v53 = vor.u32 %v2112_v51, %v1979_v50  ;;  %v1973_v57 = vld [vmem:[#allocation5 + $0x34] sm:$0xf0]  ;;  %v2113_v60 = vld [vmem:[#allocation5 + $0x40] sm:$0xf0] }
  0x27   :  { %500 = vmatpush.bf16.msrb.mxu0 %v1972_v32  ;;  %v1984_v55 = vor.u32 %v2108_v52, %v1981_v54  ;;  %v1976_v58 = vor.u32 %v2107_v56, %v1973_v57  ;;  %v1988_v61 = vor.u32 %v2113_v60, %v1987_v59  ;;  %v2461_v1 = vld [vmem:[#allocation7] ss:$0 sm:$0xff]  ;;  %vm1637_vm8 = vcmask 1046534   ;;  %s1906_s10 = sshll.u32 %s2878_s7, 4  ;;  %s1907_s10 = int_to_ptr.hbm [resolvable:$true] %s1906_s10 }
  0x28   :  { %451 = vmatpush.bf16.msrb.mxu3 %v1968_v30  ;;  %vm1639_vm9 = vcmask 1047559   ;;  %vm1482_vm10 = vcmask 1044480  }
  0x29   :  { %402 = vmatpush.bf16.msrb.mxu2 %v1964_v29  ;;  %549 = vmatpush.bf16.msrb.mxu1 %v1976_v58 }
  0x2b   :  { %695 = vmatpush.bf16.msra.mxu0 %v2024_v48 }
  0x2c   :  { %646 = vmatpush.bf16.msra.mxu3 %v2020_v42 }
  0x2d   :  { %597 = vmatpush.bf16.msra.mxu2 %v2016_v38 }
  0x2f   :  { %696 = vmatpush.bf16.msra.mxu0 %v1988_v61 }
  0x30   :  { %647 = vmatpush.bf16.msra.mxu3 %v1984_v55 }
  0x31   :  { %598 = vmatpush.bf16.msra.mxu2 %v1980_v53 }
  0x32   :  { %2026 = vmatmul.msk.bf16.gmra.mxu0 %vm272_vm0, %v2395_v33  ;;  %2041 = vmatmul.msk.bf16.vlgmr.msrb.gmra.mxu2 %vm272_vm0, %v2381_v20 }
  0x33   :  { %2031 = vmatmul.msk.bf16.gmra.mxu3 %vm272_vm0, %v2397_v34 }
  0x34   :  { %2034 = vmatmul.msk.bf16.gmra.mxu1 %vm272_vm0, %v2395_v33 }
  0x42   :  { %2027 = vmatmul.msk.bf16.gmra.mxu0 %vm272_vm0, %v2407_v44  ;;  %2042 = vmatmul.msk.bf16.gmra.mxu2 %vm272_vm0, %v2395_v33 }
  0x43   :  { %2032 = vmatmul.msk.bf16.gmra.mxu3 %vm272_vm0, %v2409_v45 }
  0x44   :  { %2035 = vmatmul.msk.bf16.gmra.mxu1 %vm272_vm0, %v2407_v44 }
  0x52   :  { %2028 = vmatmul.msk.bf16.gmra.mxu0 %vm272_vm0, %v2419_v49  ;;  %2043 = vmatmul.msk.bf16.gmra.mxu2 %vm272_vm0, %v2407_v44 }
  0x53   :  { %2049 = vmatmul.msk.bf16.vlgmr.msrb.gmra.mxu3 %vm272_vm0, %v2381_v20 }
  0x54   :  { %2036 = vmatmul.msk.bf16.gmra.mxu1 %vm272_vm0, %v2419_v49 }
  0x62   :  { %2044 = vmatmul.msk.bf16.gmra.mxu2 %vm272_vm0, %v2419_v49  ;;  %2057 = vmatmul.msk.bf16.vlgmr.msrb.gmra.mxu0 %vm272_vm0, %v2381_v20 }
  0x63   :  { %2050 = vmatmul.msk.bf16.gmra.mxu3 %vm272_vm0, %v2395_v33 }
  0x64   :  { %2037 = vmatmul.msk.bf16.gmra.mxu1 %vm272_vm0, %v2383_v21 }
  0x72   :  { %2045 = vmatmul.msk.bf16.gmra.mxu2 %vm272_vm0, %v2383_v21  ;;  %2058 = vmatmul.msk.bf16.gmra.mxu0 %vm272_vm0, %v2395_v33 }
  0x73   :  { %2051 = vmatmul.msk.bf16.gmra.mxu3 %vm272_vm0, %v2407_v44 }
  0x74   :  { %2038 = vmatmul.msk.bf16.gmra.mxu1 %vm272_vm0, %v2385_v22 }
  0x82   :  { %2046 = vmatmul.msk.bf16.gmra.mxu2 %vm272_vm0, %v2385_v22  ;;  %2059 = vmatmul.msk.bf16.gmra.mxu0 %vm272_vm0, %v2407_v44 }
  0x83   :  { %2052 = vmatmul.msk.bf16.gmra.mxu3 %vm272_vm0, %v2419_v49 }
  0x84   :  { %2039 = vmatmul.msk.bf16.gmra.mxu1 %vm272_vm0, %v2397_v34 }
  0x92   :  { %2047 = vmatmul.msk.bf16.gmra.mxu2 %vm272_vm0, %v2397_v34  ;;  %2060 = vmatmul.msk.bf16.gmra.mxu0 %vm272_vm0, %v2419_v49 }
  0x93   :  { %2053 = vmatmul.msk.bf16.gmra.mxu3 %vm272_vm0, %v2383_v21 }
  0x94   :  { %2040 = vmatmul.msk.bf16.gmra.mxu1 %vm272_vm0, %v2409_v45 }
  0x9f   :  { %v306_v62 = vpop.f32.mrf.mxu0 }
  0xa1   :  { %v355_v63 = vpop.f32.mrf.mxu1 }
  0xa2   :  { %v754_v0 = vrot.slane %v355_v63, 1  ;;  %2048 = vmatmul.msk.bf16.gmra.mxu2 %vm272_vm0, %v2409_v45  ;;  %2061 = vmatmul.msk.bf16.gmra.mxu0 %vm272_vm0, %v2383_v21 }
  0xa3   :  { %2054 = vmatmul.msk.bf16.gmra.mxu3 %vm272_vm0, %v2385_v22 }
  0xa4   :  { %v786_v2 = vadd.f32 %v754_v0, %v306_v62  ;;  %2065 = vmatmul.msk.bf16.vlgmr.msrb.gmra.mxu1 %vm272_vm0, %v2381_v20 }
  0xa5   :  { %v2472_v4 = vpop.f32.mrf.mxu2 }
  0xa6   :  { %v804_v3 = vadd.f32 %v2461_v1, %v786_v2  ;;  %v2474_v5 = vpop.f32.mrf.mxu3 }
  0xa7   :  { %v308_v7 = vpop.f32.mrf.mxu0 }
  0xa8   :  { %v820_v6 = vmax.f32 %v804_v3, 0.0 }
  0xa9   :  { %v357_v8 = vpop.f32.mrf.mxu1 }
  0xaa   :  { %v837_v9 = vsel %vm836_vm1, %v820_v6, 0.0  ;;  %v755_v10 = vrot.slane %v357_v8, 1 }
  0xab   :  { %v838_v11 = vrot.slane %v837_v9, 4 }
  0xac   :  { %v787_v12 = vadd.f32 %v755_v10, %v308_v7 }
  0xad   :  { %v839_v13 = vadd.f32 %v838_v11, %v837_v9  ;;  %v2478_v15 = vpop.f32.mrf.mxu2 }
  0xae   :  { %v805_v14 = vadd.f32 %v2461_v1, %v787_v12  ;;  %v2480_v17 = vpop.f32.mrf.mxu3 }
  0xaf   :  { %v840_v16 = vrot.slane %v839_v13, 2  ;;  %v311_v19 = vpop.f32.mrf.mxu0 }
  0xb0   :  { %v821_v18 = vmax.f32 %v805_v14, 0.0 }
  0xb1   :  { %v360_v23 = vpop.f32.mrf.mxu1  ;;  %v841_v26 = vadd.f32 %v840_v16, %v839_v13 }
  0xb2   :  { %v844_v24 = vsel %vm836_vm1, %v821_v18, 0.0  ;;  %v756_v25 = vrot.slane %v360_v23, 1  ;;  %2062 = vmatmul.msk.bf16.gmra.mxu0 %vm272_vm0, %v2385_v22  ;;  %2073 = vmatmul.msk.bf16.vlgmr.msra.gmra.mxu2 %vm272_vm0, %v2381_v20 }
  0xb3   :  { %v845_v27 = vrot.slane %v844_v24, 4  ;;  %2055 = vmatmul.msk.bf16.gmra.mxu3 %vm272_vm0, %v2397_v34  ;;  %v842_v32 = vrot.slane %v841_v26, 1 }
  0xb4   :  { %v788_v28 = vadd.f32 %v756_v25, %v311_v19  ;;  %2066 = vmatmul.msk.bf16.gmra.mxu1 %vm272_vm0, %v2395_v33 }
  0xb5   :  { %v846_v29 = vadd.f32 %v845_v27, %v844_v24  ;;  %v2492_v31 = vpop.f32.mrf.mxu2  ;;  %v843_v43 = vadd.f32 %v842_v32, %v841_v26 }
  0xb6   :  { %v806_v30 = vadd.f32 %v2461_v1, %v788_v28  ;;  %v2494_v36 = vpop.f32.mrf.mxu3 }
  0xb7   :  { %v847_v35 = vrot.slane %v846_v29, 2  ;;  %v313_v38 = vpop.f32.mrf.mxu0  ;;  %v949_v54 = vmul.f32 0.14285715, %v843_v43 }
  0xb8   :  { %v822_v37 = vmax.f32 %v806_v30, 0.0 }
  0xb9   :  { %v848_v39 = vadd.f32 %v847_v35, %v846_v29  ;;  %v362_v40 = vpop.f32.mrf.mxu1 }
  0xba   :  { %v851_v41 = vsel %vm836_vm1, %v822_v37, 0.0  ;;  %v757_v42 = vrot.slane %v362_v40, 1 }
  0xbb   :  { %v849_v46 = vrot.slane %v848_v39, 1  ;;  %v852_v47 = vrot.slane %v851_v41, 4 }
  0xbc   :  { %v789_v48 = vadd.f32 %v757_v42, %v313_v38 }
  0xbd   :  { %v850_v50 = vadd.f32 %v849_v46, %v848_v39  ;;  %v853_v51 = vadd.f32 %v852_v47, %v851_v41  ;;  %v2498_v53 = vpop.f32.mrf.mxu2 }
  0xbe   :  { %v807_v52 = vadd.f32 %v2461_v1, %v789_v48  ;;  %v2500_v57 = vpop.f32.mrf.mxu3 }
  0xbf   :  { %v950_v55 = vmul.f32 0.14285715, %v850_v50  ;;  %v854_v56 = vrot.slane %v853_v51, 2  ;;  %v316_v59 = vpop.f32.mrf.mxu0 }
  0xc0   :  { %v823_v58 = vmax.f32 %v807_v52, 0.0 }
  0xc1   :  { %v1628_v60 = vsel %vm1627_vm2, %v950_v55, %v949_v54  ;;  %v855_v61 = vadd.f32 %v854_v56, %v853_v51  ;;  %v365_v62 = vpop.f32.mrf.mxu1 }
  0xc2   :  { %v858_v63 = vsel %vm836_vm1, %v823_v58, 0.0  ;;  %v758_v0 = vrot.slane %v365_v62, 1  ;;  %2063 = vmatmul.msk.bf16.gmra.mxu0 %vm272_vm0, %v2397_v34  ;;  %2074 = vmatmul.msk.bf16.gmra.mxu2 %vm272_vm0, %v2395_v33 }
  0xc3   :  { %v856_v2 = vrot.slane %v855_v61, 1  ;;  %v859_v3 = vrot.slane %v858_v63, 4  ;;  %2056 = vmatmul.msk.bf16.gmra.mxu3 %vm272_vm0, %v2409_v45 }
  0xc4   :  { %v790_v6 = vadd.f32 %v758_v0, %v316_v59  ;;  %2067 = vmatmul.msk.bf16.gmra.mxu1 %vm272_vm0, %v2407_v44 }
  0xc5   :  { %v857_v7 = vadd.f32 %v856_v2, %v855_v61  ;;  %v860_v8 = vadd.f32 %v859_v3, %v858_v63  ;;  %v2513_v10 = vpop.f32.mrf.mxu2 }
  0xc6   :  { %v808_v9 = vadd.f32 %v2461_v1, %v790_v6  ;;  %v2515_v13 = vpop.f32.mrf.mxu3 }
  0xc7   :  { %v951_v11 = vmul.f32 0.14285715, %v857_v7  ;;  %v861_v12 = vrot.slane %v860_v8, 2  ;;  %v318_v16 = vpop.f32.mrf.mxu0 }
  0xc8   :  { %v824_v14 = vmax.f32 %v808_v9, 0.0 }
  0xc9   :  { %v862_v18 = vadd.f32 %v861_v12, %v860_v8  ;;  %v367_v19 = vpop.f32.mrf.mxu1  ;;  %v1630_v23 = vsel %vm1629_vm3, %v951_v11, %v1628_v60 }
  0xca   :  { %v865_v24 = vsel %vm836_vm1, %v824_v14, 0.0  ;;  %v759_v25 = vrot.slane %v367_v19, 1  ;;  %v1729_v19 = vld [vmem:[#allocation8 + $0x78] sm:$0xff] }
  0xcb   :  { %v863_v26 = vrot.slane %v862_v18, 1  ;;  %v866_v27 = vrot.slane %v865_v24, 4  ;;  %1766 = vmatpush.msra.mxu1 %v1729_v19 }
  0xcc   :  { %v791_v28 = vadd.f32 %v759_v25, %v318_v16 }
  0xcd   :  { %v864_v29 = vadd.f32 %v863_v26, %v862_v18  ;;  %v867_v30 = vadd.f32 %v866_v27, %v865_v24  ;;  %v2520_v35 = vpop.f32.mrf.mxu2 }
  0xce   :  { %v809_v32 = vadd.f32 %v2461_v1, %v791_v28  ;;  %v2522_v39 = vpop.f32.mrf.mxu3 }
  0xcf   :  { %v952_v37 = vmul.f32 0.14285715, %v864_v29  ;;  %v868_v38 = vrot.slane %v867_v30, 2  ;;  %v321_v41 = vpop.f32.mrf.mxu0 }
  0xd0   :  { %v825_v40 = vmax.f32 %v809_v32, 0.0 }
  0xd1   :  { %v869_v42 = vadd.f32 %v868_v38, %v867_v30  ;;  %v370_v43 = vpop.f32.mrf.mxu1  ;;  %v1632_v46 = vsel %vm1631_vm4, %v952_v37, %v1630_v23  ;;  %v1727_v30 = vld [vmem:[#allocation8 + $0x68] sm:$0xff] }
  0xd2   :  { %v872_v47 = vsel %vm836_vm1, %v825_v40, 0.0  ;;  %2064 = vmatmul.msk.bf16.gmra.mxu0 %vm272_vm0, %v2409_v45  ;;  %2075 = vmatmul.msk.bf16.gmra.mxu2 %vm272_vm0, %v2407_v44  ;;  %v760_v6 = vrot.slane %v370_v43, 1  ;;  %v1726_v43 = vld [vmem:[#allocation8 + $0x60] sm:$0xff] }
  0xd3   :  { %v870_v48 = vrot.slane %v869_v42, 1  ;;  %v873_v50 = vrot.slane %v872_v47, 4  ;;  %2081 = vmatmul.msk.bf16.vlgmr.msra.gmra.mxu3 %vm272_vm0, %v2381_v20 }
  0xd4   :  { %2068 = vmatmul.msk.bf16.gmra.mxu1 %vm272_vm0, %v2419_v49  ;;  %v792_v14 = vadd.f32 %v760_v6, %v321_v41  ;;  %v1723_v6 = vld [vmem:[#allocation8 + $0x48] sm:$0xff] }
  0xd5   :  { %v871_v51 = vadd.f32 %v870_v48, %v869_v42  ;;  %v874_v52 = vadd.f32 %v873_v50, %v872_v47  ;;  %v2534_v54 = vpop.f32.mrf.mxu2  ;;  %v1725_v50 = vld [vmem:[#allocation8 + $0x58] sm:$0xff] }
  0xd6   :  { %v453_v58 = vpop.f32.mrf.mxu3  ;;  %v810_v25 = vadd.f32 %v2461_v1, %v792_v14 }
  0xd7   :  { %v953_v55 = vmul.f32 0.14285715, %v871_v51  ;;  %v875_v56 = vrot.slane %v874_v52, 2  ;;  %v323_v59 = vpop.f32.mrf.mxu0  ;;  %v981_v40 = vrot.slane %v453_v58, 1 }
  0xd8   :  { %v826_v38 = vmax.f32 %v810_v25, 0.0  ;;  %v1721_v25 = vld [vmem:[#allocation8 + $0x38] sm:$0xff] }
  0xd9   :  { %v876_v60 = vadd.f32 %v875_v56, %v874_v52  ;;  %v372_v61 = vpop.f32.mrf.mxu1  ;;  %v1634_v62 = vsel %vm1633_vm5, %v953_v55, %v1632_v46  ;;  %v1013_v56 = vadd.f32 %v981_v40, %v2492_v31  ;;  %v1744_v40 = vld [vmem:[#allocation8 + $0xf0] sm:$0xff] }
  0xda   :  { %v761_v16 = vrot.slane %v372_v61, 1  ;;  %v879_v55 = vsel %vm836_vm1, %v826_v38, 0.0  ;;  %v1724_v61 = vld [vmem:[#allocation8 + $0x50] sm:$0xff] }
  0xdb   :  { %v877_v63 = vrot.slane %v876_v60, 1  ;;  %v1720_v38 = vld [vmem:[#allocation8 + $0x30] sm:$0xff] }
  0xdc   :  { %v793_v26 = vadd.f32 %v761_v16, %v323_v59  ;;  %v1722_v16 = vld [vmem:[#allocation8 + $0x40] sm:$0xff] }
  0xdd   :  { %v878_v0 = vadd.f32 %v877_v63, %v876_v60  ;;  %v2537_v2 = vpop.f32.mrf.mxu2 }
  0xde   :  { %v2539_v7 = vpop.f32.mrf.mxu3  ;;  %v811_v41 = vadd.f32 %v2461_v1, %v793_v26  ;;  %v1745_v26 = vld [vmem:[#allocation8 + $0xf8] sm:$0xff] }
  0xdf   :  { %v954_v3 = vmul.f32 0.14285715, %v878_v0  ;;  %v502_v8 = vpop.f32.mrf.mxu0  ;;  %v2571_v0 = vld [vmem:[#allocation7 + $0x1] ss:$0 sm:$0xff]  ;;  %1789 = vmatpush.msrb.mxu2 %v1745_v26 }
  0xe0   :  { %v1045_v48 = vrot.slane %v502_v8, 2  ;;  %v827_v58 = vmax.f32 %v811_v41, 0.0  ;;  %v880_v8 = vrot.slane %v879_v55, 4 }
  0xe1   :  { %v375_v9 = vpop.f32.mrf.mxu1  ;;  %v2542_v11 = vsel %vm1635_vm6, %v954_v3, %v1634_v62  ;;  %1790 = vmatpush.msrb.mxu2 %v1744_v40 }
  0xe2   :  { %v762_v12 = vrot.slane %v375_v9, 1  ;;  %2076 = vmatmul.msk.bf16.gmra.mxu2 %vm272_vm0, %v2419_v49  ;;  %2089 = vmatmul.msk.bf16.vlgmr.msra.gmra.mxu0 %vm272_vm0, %v2381_v20  ;;  %v1728_v20 = vld [vmem:[#allocation8 + $0x70] sm:$0xff]  ;;  %v1077_v63 = vadd.f32 %v1045_v48, %v1013_v56  ;;  %v886_v31 = vsel %vm836_vm1, %v827_v58, 0.0  ;;  %v1743_v48 = vld [vmem:[#allocation8 + $0xe8] sm:$0xff] }
  0xe3   :  { %2082 = vmatmul.msk.bf16.gmra.mxu3 %vm272_vm0, %v2395_v33  ;;  %1767 = vmatpush.msra.mxu1 %v1728_v20  ;;  %v881_v20 = vadd.f32 %v880_v8, %v879_v55 }
  0xe4   :  { %v794_v18 = vadd.f32 %v762_v12, %v2472_v4  ;;  %2069 = vmatmul.msk.bf16.gmra.mxu1 %vm272_vm0, %v2383_v21  ;;  %v1095_v19 = vadd.f32 %v2571_v0, %v1077_v63  ;;  %1791 = vmatpush.msrb.mxu2 %v1743_v48 }
  0xe5   :  { %v2554_v24 = vpop.f32.mrf.mxu2  ;;  %1768 = vmatpush.msra.mxu1 %v1727_v30 }
  0xe6   :  { %v812_v23 = vadd.f32 %v2461_v1, %v794_v18  ;;  %v2557_v27 = vpop.f32.mrf.mxu3  ;;  %v982_v18 = vrot.slane %v2539_v7, 1 }
  0xe7   :  { %v2559_v4 = vpop.f32.mrf.mxu0  ;;  %1769 = vmatpush.msra.mxu1 %v1726_v43 }
  0xe8   :  { %v828_v28 = vmax.f32 %v812_v23, 0.0  ;;  %v1014_v41 = vadd.f32 %v982_v18, %v2498_v53 }
  0xe9   :  { %v377_v29 = vpop.f32.mrf.mxu1  ;;  %1770 = vmatpush.msra.mxu1 %v1725_v50  ;;  %v882_v50 = vrot.slane %v881_v20, 2 }
  0xea   :  { %v893_v32 = vsel %vm836_vm1, %v828_v28, 0.0  ;;  %v763_v37 = vrot.slane %v377_v29, 1  ;;  %v887_v28 = vrot.slane %v886_v31, 4  ;;  %v983_v29 = vrot.slane %v2557_v27, 1 }
  0xeb   :  { %v894_v42 = vrot.slane %v893_v32, 4  ;;  %1771 = vmatpush.msra.mxu1 %v1724_v61 }
  0xec   :  { %v795_v46 = vadd.f32 %v763_v37, %v2478_v15  ;;  %v1015_v55 = vadd.f32 %v983_v29, %v2513_v10  ;;  %v1717_v10 = vld [vmem:[#allocation8 + $0x18] sm:$0xff]  ;;  %v1716_v29 = vld [vmem:[#allocation8 + $0x10] sm:$0xff] }
  0xed   :  { %v895_v47 = vadd.f32 %v894_v42, %v893_v32  ;;  %v2565_v52 = vpop.f32.mrf.mxu2  ;;  %1772 = vmatpush.msra.mxu1 %v1723_v6 }
  0xee   :  { %v813_v51 = vadd.f32 %v2461_v1, %v795_v46  ;;  %v2569_v60 = vpop.f32.mrf.mxu3  ;;  %v1111_v46 = vmax.f32 %v1095_v19, 0.0 }
  0xef   :  { %v896_v59 = vrot.slane %v895_v47, 2  ;;  %v507_v15 = vpop.f32.mrf.mxu0  ;;  %1773 = vmatpush.msra.mxu1 %v1722_v16  ;;  %v984_v53 = vrot.slane %v2569_v60, 1  ;;  %v883_v16 = vadd.f32 %v882_v50, %v881_v20 }
  0xf0   :  { %v829_v62 = vmax.f32 %v813_v51, 0.0  ;;  %v1047_v42 = vrot.slane %v507_v15, 2  ;;  %v888_v51 = vadd.f32 %v887_v28, %v886_v31  ;;  %v1742_v15 = vld [vmem:[#allocation8 + $0xe0] sm:$0xff]  ;;  %v1128_v6 = vsel %vm1127_vm7, %v1111_v46, 0.0 }
  0xf1   :  { %v2573_v3 = vpop.f32.mrf.mxu1  ;;  %v897_v12 = vadd.f32 %v896_v59, %v895_v47  ;;  %1774 = vmatpush.msra.mxu1 %v1721_v25  ;;  %1792 = vmatpush.msrb.mxu2 %v1742_v15  ;;  %v1016_v25 = vadd.f32 %v984_v53, %v2520_v35 }
  0xf2   :  { %v900_v9 = vsel %vm836_vm1, %v829_v62, 0.0  ;;  %2077 = vmatmul.msk.bf16.gmra.mxu2 %vm272_vm0, %v2383_v21  ;;  %2090 = vmatmul.msk.bf16.gmra.mxu0 %vm272_vm0, %v2395_v33  ;;  %v1046_v33 = vrot.slane %v2559_v4, 2  ;;  %v1719_v4 = vld [vmem:[#allocation8 + $0x28] sm:$0xff]  ;;  %v764_v61 = vrot.slane %v2573_v3, 1  ;;  %v1718_v62 = vld [vmem:[#allocation8 + $0x20] sm:$0xff]  ;;  %v1079_v63 = vadd.f32 %v1047_v42, %v1015_v55 }
  0xf3   :  { %v901_v14 = vrot.slane %v900_v9, 4  ;;  %2083 = vmatmul.msk.bf16.gmra.mxu3 %vm272_vm0, %v2407_v44  ;;  %v898_v7 = vrot.slane %v897_v12, 1  ;;  %1775 = vmatpush.msra.mxu1 %v1720_v38  ;;  %v1739_v42 = vld [vmem:[#allocation8 + $0xc8] sm:$0xff] }
  0xf4   :  { %2070 = vmatmul.msk.bf16.gmra.mxu1 %vm272_vm0, %v2385_v22  ;;  %v1078_v56 = vadd.f32 %v1046_v33, %v1014_v41  ;;  %v796_v26 = vadd.f32 %v764_v61, %v2474_v5  ;;  %v1740_v33 = vld [vmem:[#allocation8 + $0xd0] sm:$0xff]  ;;  %v1097_v20 = vadd.f32 %v2571_v0, %v1079_v63  ;;  %v884_v5 = vrot.slane %v883_v16, 1 }
  0xf5   :  { %v902_v23 = vadd.f32 %v901_v14, %v900_v9  ;;  %v2589_v30 = vpop.f32.mrf.mxu2  ;;  %v899_v58 = vadd.f32 %v898_v7, %v897_v12  ;;  %1776 = vmatpush.msra.mxu1 %v1719_v4  ;;  %v1741_v14 = vld [vmem:[#allocation8 + $0xd8] sm:$0xff]  ;;  %v889_v12 = vrot.slane %v888_v51, 2  ;;  %v1129_v7 = vrot.slane %v1128_v6, 4 }
  0xf6   :  { %v2591_v37 = vpop.f32.mrf.mxu3  ;;  %v1096_v18 = vadd.f32 %v2571_v0, %v1078_v56  ;;  %1793 = vmatpush.msrb.mxu2 %v1741_v14  ;;  %v814_v4 = vadd.f32 %v2461_v1, %v796_v26  ;;  %v1113_v55 = vmax.f32 %v1097_v20, 0.0  ;;  %v885_v53 = vadd.f32 %v884_v5, %v883_v16 }
  0xf7   :  { %v903_v32 = vrot.slane %v902_v23, 2  ;;  %v509_v43 = vpop.f32.mrf.mxu0  ;;  %1777 = vmatpush.msra.mxu1 %v1718_v62  ;;  %v985_v60 = vrot.slane %v2591_v37, 1  ;;  %v957_v19 = vmul.f32 0.14285715, %v899_v58  ;;  %v1130_v50 = vadd.f32 %v1129_v7, %v1128_v6 }
  0xf8   :  { %v1048_v31 = vrot.slane %v509_v43, 2  ;;  %1794 = vmatpush.msrb.mxu2 %v1740_v33  ;;  %v890_v43 = vadd.f32 %v889_v12, %v888_v51  ;;  %v830_v63 = vmax.f32 %v814_v4, 0.0 }
  0xf9   :  { %v904_v27 = vadd.f32 %v903_v32, %v902_v23  ;;  %v382_v47 = vpop.f32.mrf.mxu1  ;;  %1778 = vmatpush.msra.mxu1 %v1717_v10  ;;  %v1017_v46 = vadd.f32 %v985_v60, %v2534_v54  ;;  %v1714_v54 = vld [vmem:[#allocation8] sm:$0xff]  ;;  %v1142_v10 = vsel %vm1127_vm7, %v1113_v55, 0.0 }
  0xfa   :  { %v765_v9 = vrot.slane %v382_v47, 1  ;;  %v1080_v38 = vadd.f32 %v1048_v31, %v1016_v25  ;;  %1795 = vmatpush.msrb.mxu2 %v1739_v42  ;;  %v1112_v47 = vmax.f32 %v1096_v18, 0.0  ;;  %v891_v62 = vrot.slane %v890_v43, 1 }
  0xfb   :  { %v905_v59 = vrot.slane %v904_v27, 1  ;;  %1779 = vmatpush.msra.mxu1 %v1716_v29  ;;  %v1131_v31 = vrot.slane %v1130_v50, 2  ;;  %v955_v29 = vmul.f32 0.14285715, %v885_v53  ;;  %v907_v33 = vsel %vm836_vm1, %v830_v63, 0.0 }
  0xfc   :  { %v797_v37 = vadd.f32 %v765_v9, %v2480_v17  ;;  %v1738_v17 = vld [vmem:[#allocation8 + $0xc0] sm:$0xff]  ;;  %v1098_v58 = vadd.f32 %v2571_v0, %v1080_v38  ;;  %v1135_v15 = vsel %vm1127_vm7, %v1112_v47, 0.0  ;;  %v1736_v9 = vld [vmem:[#allocation8 + $0xb0] sm:$0xff]  ;;  %v1143_v7 = vrot.slane %v1142_v10, 4 }
  0xfd   :  { %v906_v8 = vadd.f32 %v905_v59, %v904_v27  ;;  %v2600_v3 = vpop.f32.mrf.mxu2  ;;  %v1715_v27 = vld [vmem:[#allocation8 + $0x8] sm:$0xff]  ;;  %1796 = vmatpush.msrb.mxu2 %v1738_v17  ;;  %v1136_v25 = vrot.slane %v1135_v15, 4  ;;  %v1132_v38 = vadd.f32 %v1131_v31, %v1130_v50  ;;  %v908_v47 = vrot.slane %v907_v33, 4 }
  0xfe   :  { %v465_v28 = vpop.f32.mrf.mxu3  ;;  %v815_v51 = vadd.f32 %v2461_v1, %v797_v37  ;;  %1780 = vmatpush.msra.mxu1 %v1715_v27  ;;  %v1114_v12 = vmax.f32 %v1098_v58, 0.0  ;;  %v1734_v37 = vld [vmem:[#allocation8 + $0xa0] sm:$0xff]  ;;  %v1638_v17 = vsel %vm1637_vm8, %v955_v29, %v2542_v11 }
  0xff   :  { %v958_v23 = vmul.f32 0.14285715, %v906_v8  ;;  %v512_v32 = vpop.f32.mrf.mxu0  ;;  %v986_v59 = vrot.slane %v465_v28, 1  ;;  %v892_v28 = vadd.f32 %v891_v62, %v890_v43  ;;  %v1137_v27 = vadd.f32 %v1136_v25, %v1135_v15  ;;  %v1730_v25 = vld [vmem:[#allocation8 + $0x80] sm:$0xff] }
 0x100   :  { %v1049_v41 = vrot.slane %v512_v32, 2  ;;  %1781 = vmatpush.msra.mxu1 %v1714_v54  ;;  %v831_v16 = vmax.f32 %v815_v51, 0.0  ;;  %v1149_v42 = vsel %vm1127_vm7, %v1114_v12, 0.0  ;;  %v1732_v51 = vld [vmem:[#allocation8 + $0x90] sm:$0xff]  ;;  %v1133_v62 = vrot.slane %v1132_v38, 1 }
 0x101   :  { %v385_v40 = vpop.f32.mrf.mxu1  ;;  %v2607_v35 = vsel %vm1627_vm2, %v958_v23, %v957_v19  ;;  %v1018_v18 = vadd.f32 %v986_v59, %v2537_v2  ;;  %v1735_v23 = vld [vmem:[#allocation8 + $0xa8] sm:$0xff]  ;;  %v956_v54 = vmul.f32 0.14285715, %v892_v28  ;;  %v1150_v59 = vrot.slane %v1149_v42, 4 }
 0x102   :  { %v766_v48 = vrot.slane %v385_v40, 1  ;;  %2078 = vmatmul.msk.bf16.gmra.mxu2 %vm272_vm0, %v2385_v22  ;;  %2091 = vmatmul.msk.bf16.gmra.mxu0 %vm272_vm0, %v2407_v44  ;;  %v1081_v56 = vadd.f32 %v1049_v41, %v1017_v46  ;;  %v1737_v44 = vld [vmem:[#allocation8 + $0xb8] sm:$0xff]  ;;  %v914_v2 = vsel %vm836_vm1, %v831_v16, 0.0 }
 0x103   :  { %2084 = vmatmul.msk.bf16.gmra.mxu3 %vm272_vm0, %v2419_v49  ;;  %1797 = vmatpush.msrb.mxu2 %v1737_v44  ;;  %v1733_v46 = vld [vmem:[#allocation8 + $0x98] sm:$0xff]  ;;  %v915_v58 = vrot.slane %v914_v2, 4 }
 0x104   :  { %2071 = vmatmul.msk.bf16.gmra.mxu1 %vm272_vm0, %v2397_v34  ;;  %v798_v22 = vadd.f32 %v766_v48, %v2494_v36  ;;  %v1099_v36 = vadd.f32 %v2571_v0, %v1081_v56 }
 0x105   :  { %v2622_v61 = vpop.f32.mrf.mxu2  ;;  %1798 = vmatpush.msrb.mxu2 %v1736_v9  ;;  %v909_v9 = vadd.f32 %v908_v47, %v907_v33 }
 0x106   :  { %v816_v6 = vadd.f32 %v2461_v1, %v798_v22  ;;  %v468_v8 = vpop.f32.mrf.mxu3  ;;  %v1115_v40 = vmax.f32 %v1099_v36, 0.0  ;;  %v1731_v36 = vld [vmem:[#allocation8 + $0x88] sm:$0xff] }
 0x107   :  { %v514_v14 = vpop.f32.mrf.mxu0  ;;  %1799 = vmatpush.msrb.mxu2 %v1735_v23  ;;  %v987_v5 = vrot.slane %v468_v8, 1  ;;  %v1138_v8 = vrot.slane %v1137_v27, 2 }
 0x108   :  { %v1050_v19 = vrot.slane %v514_v14, 2  ;;  %v832_v20 = vmax.f32 %v816_v6, 0.0  ;;  %v1156_v22 = vsel %vm1127_vm7, %v1115_v40, 0.0 }
 0x109   :  { %v387_v60 = vpop.f32.mrf.mxu1  ;;  %1800 = vmatpush.msrb.mxu2 %v1734_v37  ;;  %v1019_v15 = vadd.f32 %v987_v5, %v2554_v24  ;;  %v1157_v14 = vrot.slane %v1156_v22, 4  ;;  %v1139_v33 = vadd.f32 %v1138_v8, %v1137_v27 }
 0x10a   :  { %v767_v26 = vrot.slane %v387_v60, 1  ;;  %v1082_v32 = vadd.f32 %v1050_v19, %v1018_v18  ;;  %v921_v50 = vsel %vm836_vm1, %v832_v20, 0.0  ;;  %v916_v60 = vadd.f32 %v915_v58, %v914_v2 }
 0x10b   :  { %1801 = vmatpush.msrb.mxu2 %v1733_v46  ;;  %v922_v31 = vrot.slane %v921_v50, 4  ;;  %v1151_v19 = vadd.f32 %v1150_v59, %v1149_v42  ;;  %v1158_v37 = vadd.f32 %v1157_v14, %v1156_v22 }
 0x10c   :  { %v799_v41 = vadd.f32 %v767_v26, %v2500_v57  ;;  %v1100_v43 = vadd.f32 %v2571_v0, %v1082_v32  ;;  %v1144_v57 = vadd.f32 %v1143_v7, %v1142_v10  ;;  %v910_v7 = vrot.slane %v909_v9, 2 }
 0x10d   :  { %v2635_v48 = vpop.f32.mrf.mxu2  ;;  %1802 = vmatpush.msrb.mxu2 %v1732_v51  ;;  %v923_v20 = vadd.f32 %v922_v31, %v921_v50  ;;  %v917_v42 = vrot.slane %v916_v60, 2  ;;  %v1152_v5 = vrot.slane %v1151_v19, 2  ;;  %v1159_v51 = vrot.slane %v1158_v37, 2 }
 0x10e   :  { %v817_v4 = vadd.f32 %v2461_v1, %v799_v41  ;;  %v1116_v55 = vmax.f32 %v1100_v43, 0.0  ;;  %v470_v56 = vpop.f32.mrf.mxu3  ;;  %v1145_v24 = vrot.slane %v1144_v57, 2  ;;  %v911_v50 = vadd.f32 %v910_v7, %v909_v9 }
 0x10f   :  { %v517_v53 = vpop.f32.mrf.mxu0  ;;  %v988_v26 = vrot.slane %v470_v56, 1  ;;  %1803 = vmatpush.msrb.mxu2 %v1731_v36  ;;  %v1160_v14 = vadd.f32 %v1159_v51, %v1158_v37 }
 0x110   :  { %v833_v44 = vmax.f32 %v817_v4, 0.0  ;;  %v1163_v63 = vsel %vm1127_vm7, %v1116_v55, 0.0  ;;  %v1051_v6 = vrot.slane %v517_v53, 2  ;;  %v924_v55 = vrot.slane %v923_v20, 2 }
 0x111   :  { %v390_v11 = vpop.f32.mrf.mxu1  ;;  %v1164_v23 = vrot.slane %v1163_v63, 4  ;;  %1804 = vmatpush.msrb.mxu2 %v1730_v25  ;;  %v1020_v46 = vadd.f32 %v988_v26, %v2565_v52  ;;  %v1140_v52 = vrot.slane %v1139_v33, 1 }
 0x112   :  { %v928_v10 = vsel %vm836_vm1, %v833_v44, 0.0  ;;  %v768_v12 = vrot.slane %v390_v11, 1  ;;  %v1083_v18 = vadd.f32 %v1051_v6, %v1019_v15  ;;  %2079 = vmatmul.msk.bf16.gmra.mxu2 %vm272_vm0, %v2397_v34  ;;  %2092 = vmatmul.msk.bf16.gmra.mxu0 %vm272_vm0, %v2419_v49  ;;  %v2655_v34 = vsel %vm1639_vm9, %v956_v54, %v1638_v17 }
 0x113   :  { %v929_v16 = vrot.slane %v928_v10, 4  ;;  %2085 = vmatmul.msk.bf16.gmra.mxu3 %vm272_vm0, %v2383_v21  ;;  %v2657_v49 = vadd.f32 %v1133_v62, %v1132_v38  ;;  %v1165_v43 = vadd.f32 %v1164_v23, %v1163_v63  ;;  %v918_v15 = vadd.f32 %v917_v42, %v916_v60 }
 0x114   :  { %2072 = vmatmul.msk.bf16.gmra.mxu1 %vm272_vm0, %v2409_v45  ;;  %v800_v28 = vadd.f32 %v768_v12, %v2515_v13  ;;  %v1101_v29 = vadd.f32 %v2571_v0, %v1083_v18  ;;  %v2664_v13 = vadd.f32 %v1145_v24, %v1144_v57  ;;  %v1153_v63 = vadd.f32 %v1152_v5, %v1151_v19  ;;  %v2152_v5 = vld [vmem:[#allocation2 + $0x20] sm:$0xff] }
 0x115   :  { %v2659_v32 = vpop.f32.mrf.mxu2  ;;  %v930_v40 = vadd.f32 %v929_v16, %v928_v10  ;;  %v1166_v22 = vrot.slane %v1165_v43, 2  ;;  %v925_v6 = vadd.f32 %v924_v55, %v923_v20  ;;  %v919_v25 = vrot.slane %v918_v15, 1 }
 0x116   :  { %v818_v21 = vadd.f32 %v2461_v1, %v800_v28  ;;  %v1117_v41 = vmax.f32 %v1101_v29, 0.0  ;;  %v2662_v2 = vpop.f32.mrf.mxu3  ;;  %v1147_v36 = vrot.slane %v2664_v13, 1  ;;  %v1154_v26 = vrot.slane %v1153_v63, 1 }
 0x117   :  { %v519_v38 = vpop.f32.mrf.mxu0  ;;  %v931_v58 = vrot.slane %v930_v40, 2  ;;  %v1167_v24 = vadd.f32 %v1166_v22, %v1165_v43  ;;  %v926_v29 = vrot.slane %v925_v6, 1 }
 0x118   :  { %v834_v27 = vmax.f32 %v818_v21, 0.0  ;;  %v1170_v47 = vsel %vm1127_vm7, %v1117_v41, 0.0  ;;  %v1052_v17 = vrot.slane %v519_v38, 2  ;;  %v1161_v21 = vrot.slane %v1160_v14, 1 }
 0x119   :  { %v392_v4 = vpop.f32.mrf.mxu1  ;;  %v1171_v56 = vrot.slane %v1170_v47, 4  ;;  %v932_v16 = vadd.f32 %v931_v58, %v930_v40  ;;  %v1141_v40 = vadd.f32 %v1140_v52, %v1139_v33  ;;  %v1168_v38 = vrot.slane %v1167_v24, 1 }
 0x11a   :  { %v769_v54 = vrot.slane %v392_v4, 1  ;;  %v935_v57 = vsel %vm836_vm1, %v834_v27, 0.0  ;;  %v1084_v59 = vadd.f32 %v1052_v17, %v1020_v46  ;;  %v2153_v27 = vld [vmem:[#allocation2 + $0x28] sm:$0xff]  ;;  %v1148_v33 = vadd.f32 %v1147_v36, %v2664_v13 }
 0x11b   :  { %v936_v44 = vrot.slane %v935_v57, 4  ;;  %v1172_v53 = vadd.f32 %v1171_v56, %v1170_v47  ;;  %v933_v41 = vrot.slane %v932_v16, 1  ;;  %v920_v4 = vadd.f32 %v919_v25, %v918_v15 }
 0x11c   :  { %v801_v62 = vadd.f32 %v769_v54, %v2522_v39  ;;  %v1102_v11 = vadd.f32 %v2571_v0, %v1084_v59  ;;  %v912_v39 = vrot.slane %v911_v50, 1  ;;  %v1240_v56 = vmul.f32 0.16666667, %v2657_v49 }
 0x11d   :  { %v937_v8 = vadd.f32 %v936_v44, %v935_v57  ;;  %v1173_v9 = vrot.slane %v1172_v53, 2  ;;  %v2672_v10 = vpop.f32.mrf.mxu2  ;;  %v927_v54 = vadd.f32 %v926_v29, %v925_v6  ;;  %v1162_v57 = vadd.f32 %v1161_v21, %v1160_v14 }
 0x11e   :  { %v819_v31 = vadd.f32 %v2461_v1, %v801_v62  ;;  %v1118_v12 = vmax.f32 %v1102_v11, 0.0  ;;  %v2675_v18 = vpop.f32.mrf.mxu3  ;;  %v913_v43 = vadd.f32 %v912_v39, %v911_v50  ;;  %v1241_v50 = vmul.f32 0.16666667, %v1141_v40 }
 0x11f   :  { %v938_v60 = vrot.slane %v937_v8, 2  ;;  %v2677_v23 = vpop.f32.mrf.mxu0  ;;  %v1174_v28 = vadd.f32 %v1173_v9, %v1172_v53  ;;  %v934_v44 = vadd.f32 %v933_v41, %v932_v16  ;;  %v1242_v15 = vmul.f32 0.16666667, %v1148_v33 }
 0x120   :  { %v835_v19 = vmax.f32 %v819_v31, 0.0  ;;  %v1177_v1 = vsel %vm1127_vm7, %v1118_v12, 0.0  ;;  %v959_v53 = vmul.f32 0.14285715, %v913_v43  ;;  %v960_v11 = vmul.f32 0.14285715, %v920_v4 }
 0x121   :  { %v939_v7 = vadd.f32 %v938_v60, %v937_v8  ;;  %v1178_v37 = vrot.slane %v1177_v1, 4  ;;  %v1175_v17 = vrot.slane %v1174_v28, 1  ;;  %v1666_v31 = vsel %vm1627_vm2, %v1241_v50, %v1240_v56 }
 0x122   :  { %v942_v20 = vsel %vm836_vm1, %v835_v19, 0.0  ;;  %2080 = vmatmul.msk.bf16.gmra.mxu2 %vm272_vm0, %v2409_v45  ;;  %2093 = vmatmul.msk.bf16.gmra.mxu0 %vm272_vm0, %v2152_v5  ;;  %v1155_v45 = vadd.f32 %v1154_v26, %v1153_v63  ;;  %v961_v63 = vmul.f32 0.14285715, %v927_v54  ;;  %v1244_v36 = vmul.f32 0.16666667, %v1162_v57 }
 0x123   :  { %v943_v42 = vrot.slane %v942_v20, 4  ;;  %v1179_v46 = vadd.f32 %v1178_v37, %v1177_v1  ;;  %2086 = vmatmul.msk.bf16.gmra.mxu3 %vm272_vm0, %v2153_v27  ;;  %v940_v47 = vrot.slane %v939_v7, 1  ;;  %v1176_v8 = vadd.f32 %v1175_v17, %v1174_v28 }
 0x124   :  { %1782 = vmatmul.f32.vlgmr.msra.gmra.mxu1 %v2655_v34  ;;  %v1169_v34 = vadd.f32 %v1168_v38, %v1167_v24  ;;  %v1243_v49 = vmul.f32 0.16666667, %v1155_v45  ;;  %v962_v14 = vmul.f32 0.14285715, %v934_v44  ;;  %v1642_v16 = vsel %vm1629_vm3, %v959_v53, %v2607_v35  ;;  %v2714_v53 = vpop.f32.mrf.mxu1 }
 0x125   :  { %v944_v55 = vadd.f32 %v943_v42, %v942_v20  ;;  %v1180_v51 = vrot.slane %v1179_v46, 2  ;;  %v2688_v58 = vpop.f32.mrf.mxu2  ;;  %v941_v13 = vadd.f32 %v940_v47, %v939_v7  ;;  %v1643_v25 = vsel %vm1631_vm4, %v960_v11, %v1642_v16  ;;  %v2154_v47 = vld [vmem:[#allocation2 + $0x30] sm:$0xff] }
 0x126   :  { %v478_v22 = vpop.f32.mrf.mxu3  ;;  %v1245_v39 = vmul.f32 0.16666667, %v1169_v34  ;;  %v1246_v26 = vmul.f32 0.16666667, %v1176_v8  ;;  %v1667_v28 = vsel %vm1629_vm3, %v1242_v15, %v1666_v31  ;;  %v1644_v1 = vsel %vm1633_vm5, %v961_v63, %v1643_v25 }
 0x127   :  { %v945_v59 = vrot.slane %v944_v55, 2  ;;  %v1181_v62 = vadd.f32 %v1180_v51, %v1179_v46  ;;  %v524_v52 = vpop.f32.mrf.mxu0  ;;  %v963_v60 = vmul.f32 0.14285715, %v941_v13  ;;  %v1668_v7 = vsel %vm1631_vm4, %v1243_v49, %v1667_v28 }
 0x128   :  { %v1645_v40 = vsel %vm1635_vm6, %v962_v14, %v1644_v1  ;;  %v1669_v21 = vsel %vm1633_vm5, %v1244_v36, %v1668_v7  ;;  %v990_v17 = vrot.slane %v2675_v18, 1  ;;  %v989_v45 = vrot.slane %v2662_v2, 1 }
 0x129   :  { %v946_v9 = vadd.f32 %v945_v59, %v944_v55  ;;  %v1182_v6 = vrot.slane %v1181_v62, 1  ;;  %v1646_v42 = vsel %vm1637_vm8, %v963_v60, %v1645_v40  ;;  %v1670_v5 = vsel %vm1635_vm6, %v1245_v39, %v1669_v21 }
 0x12a   :  { %v1671_v38 = vsel %vm1637_vm8, %v1246_v26, %v1670_v5  ;;  %v991_v55 = vrot.slane %v478_v22, 1  ;;  %v1054_v54 = vrot.slane %v524_v52, 2  ;;  %v1022_v57 = vadd.f32 %v990_v17, %v2600_v3 }
 0x12b   :  { %v947_v12 = vrot.slane %v946_v9, 1  ;;  %v1183_v24 = vadd.f32 %v1182_v6, %v1181_v62  ;;  %v1021_v18 = vadd.f32 %v989_v45, %v2589_v30  ;;  %v2155_v30 = vld [vmem:[#allocation2 + $0x38] sm:$0xff] }
 0x12c   :  { %v1023_v34 = vadd.f32 %v991_v55, %v2622_v61  ;;  %v1086_v22 = vadd.f32 %v1054_v54, %v1022_v57 }
 0x12d   :  { %v948_v19 = vadd.f32 %v947_v12, %v946_v9  ;;  %v1247_v29 = vmul.f32 0.16666667, %v1183_v24  ;;  %v2699_v41 = vpop.f32.mrf.mxu2  ;;  %v2729_v12 = vpop.f32.mrf.mxu1 }
 0x12e   :  { %v480_v20 = vpop.f32.mrf.mxu3 }
 0x12f   :  { %v964_v37 = vmul.f32 0.14285715, %v948_v19  ;;  %v527_v35 = vpop.f32.mrf.mxu0  ;;  %v1672_v46 = vsel %vm1639_vm9, %v1247_v29, %v1671_v38  ;;  %v992_v51 = vrot.slane %v480_v20, 1 }
 0x130   :  { %v1055_v50 = vrot.slane %v527_v35, 2 }
 0x131   :  { %v1647_v43 = vsel %vm1639_vm9, %v964_v37, %v1646_v42  ;;  %v1024_v62 = vadd.f32 %v992_v51, %v2635_v48 }
 0x132   :  { %1785 = vmatmul.f32.gmra.mxu1 %v1647_v43  ;;  %2094 = vmatmul.msk.bf16.gmra.mxu0 %vm272_vm0, %v2153_v27  ;;  %v1053_v27 = vrot.slane %v2677_v23, 2  ;;  %v1087_v2 = vadd.f32 %v1055_v50, %v1023_v34  ;;  %v1104_v23 = vadd.f32 %v2571_v0, %v1086_v22 }
 0x133   :  { %1805 = vmatmul.f32.vlgmr.msrb.gmra.mxu2 %v1672_v46  ;;  %2087 = vmatmul.msk.bf16.gmra.mxu3 %vm272_vm0, %v2154_v47 }
 0x134   :  { %v1085_v15 = vadd.f32 %v1053_v27, %v1021_v18  ;;  %v1105_v61 = vadd.f32 %v2571_v0, %v1087_v2  ;;  %v1120_v31 = vmax.f32 %v1104_v23, 0.0 }
 0x135   :  { %v2709_v56 = vpop.f32.mrf.mxu2  ;;  %v2742_v45 = vpop.f32.mrf.mxu1 }
 0x136   :  { %v483_v33 = vpop.f32.mrf.mxu3  ;;  %v1103_v48 = vadd.f32 %v2571_v0, %v1085_v15  ;;  %v1121_v14 = vmax.f32 %v1105_v61, 0.0  ;;  %v1191_v26 = vsel %vm1127_vm7, %v1120_v31, 0.0 }
 0x137   :  { %v529_v4 = vpop.f32.mrf.mxu0  ;;  %v993_v59 = vrot.slane %v483_v33, 1  ;;  %v1192_v40 = vrot.slane %v1191_v26, 4 }
 0x138   :  { %v1056_v44 = vrot.slane %v529_v4, 2  ;;  %v1119_v60 = vmax.f32 %v1103_v48, 0.0  ;;  %v1198_v1 = vsel %vm1127_vm7, %v1121_v14, 0.0 }
 0x139   :  { %v1025_v11 = vadd.f32 %v993_v59, %v2659_v32  ;;  %v1193_v55 = vadd.f32 %v1192_v40, %v1191_v26 }
 0x13a   :  { %v1088_v3 = vadd.f32 %v1056_v44, %v1024_v62  ;;  %v1184_v29 = vsel %vm1127_vm7, %v1119_v60, 0.0 }
 0x13b   :  { %v1185_v43 = vrot.slane %v1184_v29, 4  ;;  %v1194_v18 = vrot.slane %v1193_v55, 2 }
 0x13c   :  { %v1106_v63 = vadd.f32 %v2571_v0, %v1088_v3 }
 0x13d   :  { %v2723_v49 = vpop.f32.mrf.mxu2  ;;  %v1186_v57 = vadd.f32 %v1185_v43, %v1184_v29  ;;  %v1195_v61 = vadd.f32 %v1194_v18, %v1193_v55 }
 0x13e   :  { %v485_v13 = vpop.f32.mrf.mxu3  ;;  %v1122_v16 = vmax.f32 %v1106_v63, 0.0 }
 0x13f   :  { %v532_v52 = vpop.f32.mrf.mxu0  ;;  %v994_v6 = vrot.slane %v485_v13, 1  ;;  %v1187_v2 = vrot.slane %v1186_v57, 2 }
 0x140   :  { %v1057_v8 = vrot.slane %v532_v52, 2  ;;  %v1205_v7 = vsel %vm1127_vm7, %v1122_v16, 0.0  ;;  %v1196_v16 = vrot.slane %v1195_v61, 1 }
 0x141   :  { %v1026_v24 = vadd.f32 %v994_v6, %v2672_v10  ;;  %v1199_v10 = vrot.slane %v1198_v1, 4  ;;  %v1206_v38 = vrot.slane %v1205_v7, 4 }
 0x142   :  { %v1089_v9 = vadd.f32 %v1057_v8, %v1025_v11  ;;  %2095 = vmatmul.msk.bf16.gmra.mxu0 %vm272_vm0, %v2154_v47 }
 0x143   :  { %2088 = vmatmul.msk.bf16.gmra.mxu3 %vm272_vm0, %v2155_v30  ;;  %v1200_v51 = vadd.f32 %v1199_v10, %v1198_v1  ;;  %v1207_v27 = vadd.f32 %v1206_v38, %v1205_v7 }
 0x144   :  { %v1107_v32 = vadd.f32 %v2571_v0, %v1089_v9 }
 0x145   :  { %v2738_v35 = vpop.f32.mrf.mxu2  ;;  %v1208_v52 = vrot.slane %v1207_v27, 2 }
 0x146   :  { %v488_v36 = vpop.f32.mrf.mxu3  ;;  %v1123_v25 = vmax.f32 %v1107_v32, 0.0  ;;  %v1188_v32 = vadd.f32 %v1187_v2, %v1186_v57 }
 0x147   :  { %v534_v39 = vpop.f32.mrf.mxu0  ;;  %v995_v20 = vrot.slane %v488_v36, 1  ;;  %v1209_v31 = vadd.f32 %v1208_v52, %v1207_v27  ;;  %v2752_v36 = vpop.f32.mrf.mxu1 }
 0x148   :  { %v1058_v19 = vrot.slane %v534_v39, 2  ;;  %v1212_v21 = vsel %vm1127_vm7, %v1123_v25, 0.0 }
 0x149   :  { %v1213_v47 = vrot.slane %v1212_v21, 4  ;;  %v1027_v33 = vadd.f32 %v995_v20, %v2688_v58  ;;  %v1201_v58 = vrot.slane %v1200_v51, 2  ;;  %v1210_v1 = vrot.slane %v1209_v31, 1  ;;  %v1761_v20 = vld [vmem:[#allocation8 + $0x178] sm:$0xff] }
 0x14a   :  { %v1090_v28 = vadd.f32 %v1058_v19, %v1026_v24  ;;  %1812 = vmatpush.msrb.mxu3 %v1761_v20 }
 0x14b   :  { %v1214_v59 = vadd.f32 %v1213_v47, %v1212_v21  ;;  %v1202_v63 = vadd.f32 %v1201_v58, %v1200_v51  ;;  %v1197_v21 = vadd.f32 %v1196_v16, %v1195_v61  ;;  %v1760_v51 = vld [vmem:[#allocation8 + $0x170] sm:$0xff]  ;;  %v1273_v16 = vrot.slane %v2723_v49, 1 }
 0x14c   :  { %v1108_v37 = vadd.f32 %v2571_v0, %v1090_v28  ;;  %v1189_v28 = vrot.slane %v1188_v32, 1  ;;  %1813 = vmatpush.msrb.mxu3 %v1760_v51 }
 0x14d   :  { %v2748_v15 = vpop.f32.mrf.mxu2  ;;  %v1215_v3 = vrot.slane %v1214_v59, 2 }
 0x14e   :  { %v1124_v42 = vmax.f32 %v1108_v37, 0.0  ;;  %v490_v5 = vpop.f32.mrf.mxu3  ;;  %v1190_v38 = vadd.f32 %v1189_v28, %v1188_v32 }
 0x14f   :  { %v537_v46 = vpop.f32.mrf.mxu0  ;;  %v996_v44 = vrot.slane %v490_v5, 1  ;;  %v1216_v39 = vadd.f32 %v1215_v3, %v1214_v59 }
 0x150   :  { %v1219_v4 = vsel %vm1127_vm7, %v1124_v42, 0.0  ;;  %v1059_v17 = vrot.slane %v537_v46, 2  ;;  %v1211_v46 = vadd.f32 %v1210_v1, %v1209_v31  ;;  %v1248_v59 = vmul.f32 0.16666667, %v1190_v38 }
 0x151   :  { %v1220_v54 = vrot.slane %v1219_v4, 4  ;;  %v1028_v8 = vadd.f32 %v996_v44, %v2699_v41  ;;  %v1203_v41 = vrot.slane %v1202_v63, 1  ;;  %v1217_v37 = vrot.slane %v1216_v39, 1 }
 0x152   :  { %v1091_v50 = vadd.f32 %v1059_v17, %v1027_v33  ;;  %2096 = vmatmul.msk.bf16.gmra.mxu0 %vm272_vm0, %v2155_v30  ;;  %v561_v17 = vpop.f32.mrf.mxu1  ;;  %v1251_v44 = vmul.f32 0.16666667, %v1211_v46 }
 0x153   :  { %v1221_v22 = vadd.f32 %v1220_v54, %v1219_v4  ;;  %v1204_v5 = vadd.f32 %v1203_v41, %v1202_v63  ;;  %v1218_v33 = vadd.f32 %v1217_v37, %v1216_v39  ;;  %v1249_v4 = vmul.f32 0.16666667, %v1197_v21  ;;  %v1758_v41 = vld [vmem:[#allocation8 + $0x160] sm:$0xff] }
 0x154   :  { %v1109_v34 = vadd.f32 %v2571_v0, %v1091_v50  ;;  %v1274_v39 = vrot.slane %v2738_v35, 1  ;;  %v1305_v35 = vadd.f32 %v1273_v16, %v2729_v12  ;;  %v1756_v12 = vld [vmem:[#allocation8 + $0x150] sm:$0xff]  ;;  %v1750_v16 = vld [vmem:[#allocation8 + $0x120] sm:$0xff] }
 0x155   :  { %v1222_v30 = vrot.slane %v1221_v22, 2  ;;  %v1250_v50 = vmul.f32 0.16666667, %v1204_v5  ;;  %v1673_v2 = vsel %vm1627_vm2, %v1249_v4, %v1248_v59  ;;  %v1754_v59 = vld [vmem:[#allocation8 + $0x140] sm:$0xff] }
 0x156   :  { %v1125_v62 = vmax.f32 %v1109_v34, 0.0  ;;  %v2746_v13 = vpop.f32.mrf.mxu3  ;;  %v1306_v1 = vadd.f32 %v1274_v39, %v2742_v45  ;;  %v1757_v45 = vld [vmem:[#allocation8 + $0x158] sm:$0xff] }
 0x157   :  { %v539_v11 = vpop.f32.mrf.mxu0  ;;  %v1223_v24 = vadd.f32 %v1222_v30, %v1221_v22  ;;  %v1252_v22 = vmul.f32 0.16666667, %v1218_v33 }
 0x158   :  { %v1226_v23 = vsel %vm1127_vm7, %v1125_v62, 0.0  ;;  %v1060_v9 = vrot.slane %v539_v11, 2  ;;  %v1674_v11 = vsel %vm1629_vm3, %v1250_v50, %v1673_v2 }
 0x159   :  { %v1227_v48 = vrot.slane %v1226_v23, 4  ;;  %v1224_v10 = vrot.slane %v1223_v24, 1 }
 0x15a   :  { %v1092_v6 = vadd.f32 %v1060_v9, %v1028_v8  ;;  %v563_v32 = vpop.f32.mrf.mxu1 }
 0x15b   :  { %v1228_v14 = vadd.f32 %v1227_v48, %v1226_v23  ;;  %v1225_v54 = vadd.f32 %v1224_v10, %v1223_v24  ;;  %v1675_v23 = vsel %vm1631_vm4, %v1251_v44, %v1674_v11  ;;  %v1759_v48 = vld [vmem:[#allocation8 + $0x168] sm:$0xff]  ;;  %v1275_v24 = vrot.slane %v2748_v15, 1 }
 0x15c   :  { %v1110_v60 = vadd.f32 %v2571_v0, %v1092_v6  ;;  %v610_v0 = vpop.f32.mrf.mxu2  ;;  %v1676_v9 = vsel %vm1633_vm5, %v1252_v22, %v1675_v23  ;;  %1814 = vmatpush.msrb.mxu3 %v1759_v48 }
 0x15d   :  { %v1229_v19 = vrot.slane %v1228_v14, 2  ;;  %v1253_v62 = vmul.f32 0.16666667, %v1225_v54  ;;  %v1307_v15 = vadd.f32 %v1275_v24, %v2752_v36  ;;  %v1755_v54 = vld [vmem:[#allocation8 + $0x148] sm:$0xff] }
 0x15e   :  { %v1126_v25 = vmax.f32 %v1110_v60, 0.0  ;;  %v2755_v26 = vpop.f32.mrf.mxu3  ;;  %v1272_v60 = vrot.slane %v2709_v56, 1  ;;  %1815 = vmatpush.msrb.mxu3 %v1758_v41  ;;  %v1336_v56 = vrot.slane %v2746_v13, 2 }
 0x15f   :  { %v1230_v29 = vadd.f32 %v1229_v19, %v1228_v14  ;;  %v2757_v7 = vpop.f32.mrf.mxu0  ;;  %v1677_v30 = vsel %vm1635_vm6, %v1253_v62, %v1676_v9  ;;  %v1337_v49 = vrot.slane %v2755_v26, 2 }
 0x160   :  { %v1233_v40 = vsel %vm1127_vm7, %v1126_v25, 0.0  ;;  %v1276_v25 = vrot.slane %v610_v0, 1  ;;  %v1304_v37 = vadd.f32 %v1272_v60, %v2714_v53  ;;  %v1400_v53 = vrot.slane %v2757_v7, 3  ;;  %1816 = vmatpush.msrb.mxu3 %v1757_v45  ;;  %v1747_v45 = vld [vmem:[#allocation8 + $0x108] sm:$0xff] }
 0x161   :  { %v1234_v42 = vrot.slane %v1233_v40, 4  ;;  %v1231_v43 = vrot.slane %v1230_v29, 1  ;;  %v1369_v46 = vadd.f32 %v1337_v49, %v1305_v35 }
 0x162   :  { %v1308_v21 = vadd.f32 %v1276_v25, %v561_v17  ;;  %v1368_v38 = vadd.f32 %v1336_v56, %v1304_v37  ;;  %1817 = vmatpush.msrb.mxu3 %v1756_v12 }
 0x163   :  { %v1235_v47 = vadd.f32 %v1234_v42, %v1233_v40  ;;  %v1232_v27 = vadd.f32 %v1231_v43, %v1230_v29  ;;  %v566_v40 = vpop.f32.mrf.mxu1 }
 0x164   :  { %v2762_v3 = vpop.f32.mrf.mxu2  ;;  %v1432_v50 = vadd.f32 %v1400_v53, %v1368_v38  ;;  %1818 = vmatpush.msrb.mxu3 %v1755_v54 }
 0x165   :  { %v1236_v55 = vrot.slane %v1235_v47, 2  ;;  %v1254_v52 = vmul.f32 0.16666667, %v1232_v27  ;;  %v1277_v51 = vrot.slane %v2762_v3, 1 }
 0x166   :  { %v654_v57 = vpop.f32.mrf.mxu3  ;;  %1819 = vmatpush.msrb.mxu3 %v1754_v59 }
 0x167   :  { %v700_v34 = vpop.f32.mrf.mxu0  ;;  %v1237_v18 = vadd.f32 %v1236_v55, %v1235_v47  ;;  %v1678_v6 = vsel %vm1637_vm8, %v1254_v52, %v1677_v30  ;;  %v1338_v29 = vrot.slane %v654_v57, 2  ;;  %v2785_v57 = vld [vmem:[#allocation7 + $0x2] ss:$0 sm:$0xff]  ;;  %v1309_v62 = vadd.f32 %v1277_v51, %v563_v32 }
 0x168   :  { %v1401_v10 = vrot.slane %v700_v34, 3  ;;  %v1450_v2 = vadd.f32 %v2785_v57, %v1432_v50 }
 0x169   :  { %v1238_v58 = vrot.slane %v1237_v18, 1  ;;  %v1370_v5 = vadd.f32 %v1338_v29, %v1306_v1  ;;  %v1749_v1 = vld [vmem:[#allocation8 + $0x118] sm:$0xff] }
 0x16a   :  { %v1433_v13 = vadd.f32 %v1401_v10, %v1369_v46 }
 0x16b   :  { %v1239_v8 = vadd.f32 %v1238_v58, %v1237_v18  ;;  %v2788_v18 = vpop.f32.mrf.mxu1  ;;  %v1753_v58 = vld [vmem:[#allocation8 + $0x138] sm:$0xff] }
 0x16c   :  { %v2773_v19 = vpop.f32.mrf.mxu2  ;;  %v1451_v44 = vadd.f32 %v2785_v57, %v1433_v13  ;;  %1820 = vmatpush.msrb.mxu3 %v1753_v58 }
 0x16d   :  { %v1255_v61 = vmul.f32 0.16666667, %v1239_v8  ;;  %v1752_v8 = vld [vmem:[#allocation8 + $0x130] sm:$0xff]  ;;  %v1278_v23 = vrot.slane %v2773_v19, 1 }
 0x16e   :  { %v656_v63 = vpop.f32.mrf.mxu3  ;;  %v1467_v9 = vmax.f32 %v1451_v44, 0.0  ;;  %1821 = vmatpush.msrb.mxu3 %v1752_v8 }
 0x16f   :  { %v703_v31 = vpop.f32.mrf.mxu0  ;;  %v1679_v14 = vsel %vm1639_vm9, %v1255_v61, %v1678_v6  ;;  %v1339_v0 = vrot.slane %v656_v63, 2  ;;  %v1751_v63 = vld [vmem:[#allocation8 + $0x128] sm:$0xff]  ;;  %v1466_v6 = vmax.f32 %v1450_v2, 0.0  ;;  %v1310_v24 = vadd.f32 %v1278_v23, %v566_v40 }
 0x170   :  { %1808 = vmatmul.f32.gmra.mxu2 %v1679_v14  ;;  %v1402_v43 = vrot.slane %v703_v31, 3  ;;  %1822 = vmatpush.msrb.mxu3 %v1751_v63  ;;  %v1490_v41 = vsel %vm1482_vm10, %v1467_v9, 0.0 }
 0x171   :  { %v1371_v33 = vadd.f32 %v1339_v0, %v1307_v15  ;;  %v1483_v29 = vsel %vm1482_vm10, %v1466_v6, 0.0  ;;  %v1491_v56 = vrot.slane %v1490_v41, 4  ;;  %v1748_v15 = vld [vmem:[#allocation8 + $0x110] sm:$0xff] }
 0x172   :  { %v1434_v17 = vadd.f32 %v1402_v43, %v1370_v5  ;;  %1823 = vmatpush.msrb.mxu3 %v1750_v16 }
 0x173   :  { %v2802_v35 = vpop.f32.mrf.mxu1  ;;  %v1492_v12 = vadd.f32 %v1491_v56, %v1490_v41 }
 0x174   :  { %v2782_v36 = vpop.f32.mrf.mxu2  ;;  %v1452_v22 = vadd.f32 %v2785_v57, %v1434_v17  ;;  %1824 = vmatpush.msrb.mxu3 %v1749_v1 }
 0x175   :  { %v1279_v38 = vrot.slane %v2782_v36, 1 }
 0x176   :  { %v659_v28 = vpop.f32.mrf.mxu3  ;;  %v1468_v30 = vmax.f32 %v1452_v22, 0.0  ;;  %1825 = vmatpush.msrb.mxu3 %v1748_v15 }
 0x177   :  { %v705_v20 = vpop.f32.mrf.mxu0  ;;  %v1340_v42 = vrot.slane %v659_v28, 2  ;;  %v1311_v51 = vadd.f32 %v1279_v38, %v2788_v18 }
 0x178   :  { %v1403_v47 = vrot.slane %v705_v20, 3  ;;  %v1497_v28 = vsel %vm1482_vm10, %v1468_v30, 0.0  ;;  %1826 = vmatpush.msrb.mxu3 %v1747_v45 }
 0x179   :  { %v1372_v26 = vadd.f32 %v1340_v42, %v1308_v21  ;;  %v1498_v40 = vrot.slane %v1497_v28, 4  ;;  %v1484_v42 = vrot.slane %v1483_v29, 4 }
 0x17a   :  { %v1435_v27 = vadd.f32 %v1403_v47, %v1371_v33  ;;  %v1746_v33 = vld [vmem:[#allocation8 + $0x100] sm:$0xff] }
 0x17b   :  { %1827 = vmatpush.msrb.mxu3 %v1746_v33  ;;  %v1485_v17 = vadd.f32 %v1484_v42, %v1483_v29 }
 0x17c   :  { %v1453_v52 = vadd.f32 %v2785_v57, %v1435_v27  ;;  %v2795_v39 = vpop.f32.mrf.mxu2 }
 0x17d   :  { %v1486_v58 = vrot.slane %v1485_v17, 2 }
 0x17e   :  { %v661_v4 = vpop.f32.mrf.mxu3  ;;  %v1469_v31 = vmax.f32 %v1453_v52, 0.0 }
 0x17f   :  { %v708_v55 = vpop.f32.mrf.mxu0  ;;  %v1341_v11 = vrot.slane %v661_v4, 2  ;;  %v1487_v63 = vadd.f32 %v1486_v58, %v1485_v17 }
 0x180   :  { %v1404_v7 = vrot.slane %v708_v55, 3  ;;  %v1504_v20 = vsel %vm1482_vm10, %v1469_v31, 0.0 }
 0x181   :  { %v1373_v32 = vadd.f32 %v1341_v11, %v1309_v62  ;;  %v1505_v5 = vrot.slane %v1504_v20, 4  ;;  %v2813_v62 = vpop.f32.mrf.mxu1  ;;  %v1488_v1 = vrot.slane %v1487_v63, 1 }
 0x182   :  { %v1436_v34 = vadd.f32 %v1404_v7, %v1372_v26  ;;  %v1499_v26 = vadd.f32 %v1498_v40, %v1497_v28  ;;  %v1493_v7 = vrot.slane %v1492_v12, 2 }
 0x183   :  { %v1506_v55 = vadd.f32 %v1505_v5, %v1504_v20  ;;  %v1489_v5 = vadd.f32 %v1488_v1, %v1487_v63 }
 0x184   :  { %v1454_v3 = vadd.f32 %v2785_v57, %v1436_v34  ;;  %v2807_v54 = vpop.f32.mrf.mxu2  ;;  %v1500_v44 = vrot.slane %v1499_v26, 2  ;;  %v1494_v23 = vadd.f32 %v1493_v7, %v1492_v12 }
 0x185   :  { %v1507_v2 = vrot.slane %v1506_v55, 2  ;;  %v1281_v63 = vrot.slane %v2807_v54, 1 }
 0x186   :  { %v664_v61 = vpop.f32.mrf.mxu3  ;;  %v1470_v60 = vmax.f32 %v1454_v3, 0.0  ;;  %v1501_v30 = vadd.f32 %v1500_v44, %v1499_v26  ;;  %v1595_v26 = vmul.f32 0.2, %v1489_v5 }
 0x187   :  { %v710_v48 = vpop.f32.mrf.mxu0  ;;  %v1342_v19 = vrot.slane %v664_v61, 2  ;;  %v1508_v6 = vadd.f32 %v1507_v2, %v1506_v55 }
 0x188   :  { %v1405_v14 = vrot.slane %v710_v48, 3  ;;  %v1511_v49 = vsel %vm1482_vm10, %v1470_v60, 0.0  ;;  %v1495_v60 = vrot.slane %v1494_v23, 1 }
 0x189   :  { %v1374_v21 = vadd.f32 %v1342_v19, %v1310_v24  ;;  %v1512_v46 = vrot.slane %v1511_v49, 4  ;;  %v1502_v19 = vrot.slane %v1501_v30, 1  ;;  %v1509_v29 = vrot.slane %v1508_v6, 1  ;;  %v576_v40 = vpop.f32.mrf.mxu1 }
 0x18a   :  { %v1437_v25 = vadd.f32 %v1405_v14, %v1373_v32  ;;  %v1496_v15 = vadd.f32 %v1495_v60, %v1494_v23 }
 0x18b   :  { %v1513_v50 = vadd.f32 %v1512_v46, %v1511_v49 }
 0x18c   :  { %v1455_v37 = vadd.f32 %v2785_v57, %v1437_v25  ;;  %v625_v16 = vpop.f32.mrf.mxu2  ;;  %v1596_v46 = vmul.f32 0.2, %v1496_v15 }
 0x18d   :  { %v1514_v11 = vrot.slane %v1513_v50, 2 }
 0x18e   :  { %v1471_v10 = vmax.f32 %v1455_v37, 0.0  ;;  %v666_v0 = vpop.f32.mrf.mxu3 }
 0x18f   :  { %v713_v43 = vpop.f32.mrf.mxu0  ;;  %v1343_v27 = vrot.slane %v666_v0, 2  ;;  %v1515_v32 = vadd.f32 %v1514_v11, %v1513_v50  ;;  %v1503_v0 = vadd.f32 %v1502_v19, %v1501_v30  ;;  %v1282_v30 = vrot.slane %v625_v16, 1 }
 0x190   :  { %v1518_v53 = vsel %vm1482_vm10, %v1471_v10, 0.0  ;;  %v1406_v47 = vrot.slane %v713_v43, 3  ;;  %v1510_v43 = vadd.f32 %v1509_v29, %v1508_v6 }
 0x191   :  { %v1519_v13 = vrot.slane %v1518_v53, 4  ;;  %v1375_v3 = vadd.f32 %v1343_v27, %v1311_v51  ;;  %v1516_v56 = vrot.slane %v1515_v32, 1  ;;  %v1597_v12 = vmul.f32 0.2, %v1503_v0 }
 0x192   :  { %v1438_v4 = vadd.f32 %v1406_v47, %v1374_v21  ;;  %v1698_v27 = vsel %vm1627_vm2, %v1596_v46, %v1595_v26  ;;  %v1314_v60 = vadd.f32 %v1282_v30, %v576_v40 }
 0x193   :  { %v1520_v59 = vadd.f32 %v1519_v13, %v1518_v53  ;;  %v1517_v38 = vadd.f32 %v1516_v56, %v1515_v32  ;;  %v1699_v44 = vsel %vm1629_vm3, %v1597_v12, %v1698_v27 }
 0x194   :  { %v1456_v36 = vadd.f32 %v2785_v57, %v1438_v4  ;;  %v1598_v4 = vmul.f32 0.2, %v1510_v43  ;;  %v627_v17 = vpop.f32.mrf.mxu2 }
 0x195   :  { %v1521_v9 = vrot.slane %v1520_v59, 2  ;;  %v1599_v50 = vmul.f32 0.2, %v1517_v38 }
 0x196   :  { %v1472_v34 = vmax.f32 %v1456_v36, 0.0  ;;  %v2811_v22 = vpop.f32.mrf.mxu3  ;;  %v1700_v2 = vsel %vm1631_vm4, %v1598_v4, %v1699_v44 }
 0x197   :  { %v715_v52 = vpop.f32.mrf.mxu0  ;;  %v1522_v24 = vadd.f32 %v1521_v9, %v1520_v59  ;;  %v1344_v1 = vrot.slane %v2811_v22, 2 }
 0x198   :  { %v1525_v8 = vsel %vm1482_vm10, %v1472_v34, 0.0  ;;  %v1407_v18 = vrot.slane %v715_v52, 3  ;;  %v578_v34 = vpop.f32.mrf.mxu1  ;;  %v1701_v52 = vsel %vm1633_vm5, %v1599_v50, %v1700_v2 }
 0x199   :  { %v1526_v61 = vrot.slane %v1525_v8, 4  ;;  %v1523_v21 = vrot.slane %v1522_v24, 1 }
 0x19a   :  { %v1439_v48 = vadd.f32 %v1407_v18, %v1375_v3 }
 0x19b   :  { %v1527_v31 = vadd.f32 %v1526_v61, %v1525_v8  ;;  %v1524_v53 = vadd.f32 %v1523_v21, %v1522_v24 }
 0x19c   :  { %v1457_v14 = vadd.f32 %v2785_v57, %v1439_v48  ;;  %v630_v61 = vpop.f32.mrf.mxu2  ;;  %v1280_v48 = vrot.slane %v2795_v39, 1 }
 0x19d   :  { %v1528_v41 = vrot.slane %v1527_v31, 2  ;;  %v1600_v36 = vmul.f32 0.2, %v1524_v53  ;;  %v1284_v32 = vrot.slane %v630_v61, 1 }
 0x19e   :  { %v1473_v25 = vmax.f32 %v1457_v14, 0.0  ;;  %v2817_v28 = vpop.f32.mrf.mxu3  ;;  %v1312_v19 = vadd.f32 %v1280_v48, %v2802_v35 }
 0x19f   :  { %v1529_v20 = vadd.f32 %v1528_v41, %v1527_v31  ;;  %v2819_v37 = vpop.f32.mrf.mxu0  ;;  %v1702_v3 = vsel %vm1635_vm6, %v1600_v36, %v1701_v52  ;;  %v1283_v31 = vrot.slane %v627_v17, 1  ;;  %v1345_v29 = vrot.slane %v2817_v28, 2 }
 0x1a0   :  { %v1532_v49 = vsel %vm1482_vm10, %v1473_v25, 0.0  ;;  %v581_v6 = vpop.f32.mrf.mxu1  ;;  %v1313_v25 = vadd.f32 %v1281_v63, %v2813_v62  ;;  %v1408_v0 = vrot.slane %v2819_v37, 3 }
 0x1a1   :  { %v1533_v10 = vrot.slane %v1532_v49, 4  ;;  %v1530_v42 = vrot.slane %v1529_v20, 1  ;;  %v1315_v16 = vadd.f32 %v1283_v31, %v578_v34 }
 0x1a2   :  { %v1377_v40 = vadd.f32 %v1345_v29, %v1313_v25 }
 0x1a3   :  { %v1534_v45 = vadd.f32 %v1533_v10, %v1532_v49  ;;  %v1531_v13 = vadd.f32 %v1530_v42, %v1529_v20  ;;  %v1316_v20 = vadd.f32 %v1284_v32, %v581_v6  ;;  %v1376_v10 = vadd.f32 %v1344_v1, %v1312_v19 }
 0x1a4   :  { %v632_v49 = vpop.f32.mrf.mxu2 }
 0x1a5   :  { %v1535_v47 = vrot.slane %v1534_v45, 2  ;;  %v1601_v59 = vmul.f32 0.2, %v1531_v13  ;;  %v1285_v38 = vrot.slane %v632_v49, 1  ;;  %v1440_v46 = vadd.f32 %v1408_v0, %v1376_v10 }
 0x1a6   :  { %v674_v33 = vpop.f32.mrf.mxu3 }
 0x1a7   :  { %v1536_v55 = vadd.f32 %v1535_v47, %v1534_v45  ;;  %v720_v51 = vpop.f32.mrf.mxu0  ;;  %v1703_v18 = vsel %vm1637_vm8, %v1601_v59, %v1702_v3  ;;  %v1346_v24 = vrot.slane %v674_v33, 2  ;;  %v1458_v37 = vadd.f32 %v2785_v57, %v1440_v46 }
 0x1a8   :  { %v1409_v39 = vrot.slane %v720_v51, 3  ;;  %v583_v22 = vpop.f32.mrf.mxu1 }
 0x1a9   :  { %v1537_v7 = vrot.slane %v1536_v55, 1  ;;  %v1378_v15 = vadd.f32 %v1346_v24, %v1314_v60  ;;  %v1317_v26 = vadd.f32 %v1285_v38, %v583_v22  ;;  %v1474_v44 = vmax.f32 %v1458_v37, 0.0  ;;  %v1850_v38 = vld [vmem:[#allocation10 + $0x68] sm:$0xff]  ;;  %v1849_v37 = vld [vmem:[#allocation10 + $0x60] sm:$0xff] }
 0x1aa   :  { %v1441_v35 = vadd.f32 %v1409_v39, %v1377_v40 }
 0x1ab   :  { %v1538_v58 = vadd.f32 %v1537_v7, %v1536_v55  ;;  %v1539_v61 = vsel %vm1482_vm10, %v1474_v44, 0.0 }
 0x1ac   :  { %v1459_v12 = vadd.f32 %v2785_v57, %v1441_v35  ;;  %v635_v55 = vpop.f32.mrf.mxu2  ;;  %v1540_v60 = vrot.slane %v1539_v61, 4 }
 0x1ad   :  { %v1602_v11 = vmul.f32 0.2, %v1538_v58  ;;  %v1286_v50 = vrot.slane %v635_v55, 1 }
 0x1ae   :  { %v676_v8 = vpop.f32.mrf.mxu3  ;;  %v1475_v27 = vmax.f32 %v1459_v12, 0.0 }
 0x1af   :  { %v723_v23 = vpop.f32.mrf.mxu0  ;;  %v1704_v9 = vsel %vm1639_vm9, %v1602_v11, %v1703_v18  ;;  %v1347_v56 = vrot.slane %v676_v8, 2 }
 0x1b0   :  { %1828 = vmatmul.f32.vlgmr.msrb.gmra.mxu3 %v1704_v9  ;;  %v1410_v21 = vrot.slane %v723_v23, 3  ;;  %v586_v52 = vpop.f32.mrf.mxu1  ;;  %v1546_v8 = vsel %vm1482_vm10, %v1475_v27, 0.0  ;;  %v1848_v27 = vld [vmem:[#allocation10 + $0x58] sm:$0xff] }
 0x1b1   :  { %v1379_v5 = vadd.f32 %v1347_v56, %v1315_v16  ;;  %v1318_v3 = vadd.f32 %v1286_v50, %v586_v52  ;;  %v1547_v63 = vrot.slane %v1546_v8, 4 }
 0x1b2   :  { %v1442_v45 = vadd.f32 %v1410_v21, %v1378_v15  ;;  %v1541_v21 = vadd.f32 %v1540_v60, %v1539_v61  ;;  %v1844_v60 = vld [vmem:[#allocation10 + $0x38] sm:$0xff] }
 0x1b4   :  { %v1460_v33 = vadd.f32 %v2785_v57, %v1442_v45  ;;  %v637_v24 = vpop.f32.mrf.mxu2  ;;  %v1542_v46 = vrot.slane %v1541_v21, 2 }
 0x1b5   :  { %v1287_v25 = vrot.slane %v637_v24, 1 }
 0x1b6   :  { %v679_v14 = vpop.f32.mrf.mxu3  ;;  %v1476_v36 = vmax.f32 %v1460_v33, 0.0 }
 0x1b7   :  { %v725_v41 = vpop.f32.mrf.mxu0  ;;  %v1348_v54 = vrot.slane %v679_v14, 2 }
 0x1b8   :  { %v1411_v42 = vrot.slane %v725_v41, 3  ;;  %v1553_v9 = vsel %vm1482_vm10, %v1476_v36, 0.0  ;;  %v588_v15 = vpop.f32.mrf.mxu1  ;;  %v1543_v36 = vadd.f32 %v1542_v46, %v1541_v21 }
 0x1b9   :  { %v1380_v62 = vadd.f32 %v1348_v54, %v1316_v20  ;;  %v1554_v31 = vrot.slane %v1553_v9, 4  ;;  %v1548_v20 = vadd.f32 %v1547_v63, %v1546_v8  ;;  %v1319_v40 = vadd.f32 %v1287_v25, %v588_v15  ;;  %v1845_v63 = vld [vmem:[#allocation10 + $0x40] sm:$0xff] }
 0x1ba   :  { %v1443_v53 = vadd.f32 %v1411_v42, %v1379_v5  ;;  %v1852_v5 = vld [vmem:[#allocation10 + $0x78] sm:$0xff] }
 0x1bb   :  { %v1555_v54 = vadd.f32 %v1554_v31, %v1553_v9  ;;  %1857 = vmatpush.msrb.mxu1 %v1852_v5 }
 0x1bc   :  { %v1461_v4 = vadd.f32 %v2785_v57, %v1443_v53 }
 0x1bd   :  { %v1556_v45 = vrot.slane %v1555_v54, 2 }
 0x1be   :  { %v681_v43 = vpop.f32.mrf.mxu3  ;;  %v1477_v34 = vmax.f32 %v1461_v4, 0.0 }
 0x1bf   :  { %v728_v28 = vpop.f32.mrf.mxu0  ;;  %v1349_v17 = vrot.slane %v681_v43, 2  ;;  %v1549_v43 = vrot.slane %v1548_v20, 2 }
 0x1c0   :  { %v1412_v47 = vrot.slane %v728_v28, 3  ;;  %v1560_v30 = vsel %vm1482_vm10, %v1477_v34, 0.0 }
 0x1c1   :  { %v1381_v58 = vadd.f32 %v1349_v17, %v1317_v26  ;;  %v1561_v41 = vrot.slane %v1560_v30, 4  ;;  %v1550_v4 = vadd.f32 %v1549_v43, %v1548_v20  ;;  %v1840_v43 = vld [vmem:[#allocation10 + $0x18] sm:$0xff] }
 0x1c2   :  { %v1444_v13 = vadd.f32 %v1412_v47, %v1380_v62  ;;  %v1851_v62 = vld [vmem:[#allocation10 + $0x70] sm:$0xff] }
 0x1c3   :  { %v1562_v10 = vadd.f32 %v1561_v41, %v1560_v30  ;;  %1858 = vmatpush.msrb.mxu1 %v1851_v62 }
 0x1c4   :  { %v1462_v51 = vadd.f32 %v2785_v57, %v1444_v13 }
 0x1c5   :  { %v1563_v53 = vrot.slane %v1562_v10, 2  ;;  %1859 = vmatpush.msrb.mxu1 %v1850_v38 }
 0x1c6   :  { %v684_v7 = vpop.f32.mrf.mxu3  ;;  %v1478_v11 = vmax.f32 %v1462_v51, 0.0  ;;  %v1557_v51 = vadd.f32 %v1556_v45, %v1555_v54  ;;  %v1842_v54 = vld [vmem:[#allocation10 + $0x28] sm:$0xff] }
 0x1c7   :  { %v730_v59 = vpop.f32.mrf.mxu0  ;;  %v1350_v18 = vrot.slane %v684_v7, 2  ;;  %v1564_v7 = vadd.f32 %v1563_v53, %v1562_v10  ;;  %1860 = vmatpush.msrb.mxu1 %v1849_v37  ;;  %v1783_v37 = vpop.f32.mrf.mxu1 }
 0x1c8   :  { %v1413_v2 = vrot.slane %v730_v59, 3  ;;  %v1567_v6 = vsel %vm1482_vm10, %v1478_v11, 0.0 }
 0x1c9   :  { %v1382_v32 = vadd.f32 %v1350_v18, %v1318_v3  ;;  %v1568_v1 = vrot.slane %v1567_v6, 4  ;;  %1861 = vmatpush.msrb.mxu1 %v1848_v27  ;;  %v1558_v3 = vrot.slane %v1557_v51, 1  ;;  %v1846_v18 = vld [vmem:[#allocation10 + $0x48] sm:$0xff]  ;;  %v1565_v9 = vrot.slane %v1564_v7, 1 }
 0x1ca   :  { %v1445_v23 = vadd.f32 %v1413_v2, %v1381_v58  ;;  %v1847_v58 = vld [vmem:[#allocation10 + $0x50] sm:$0xff]  ;;  %v1551_v2 = vrot.slane %v1550_v4, 1 }
 0x1cb   :  { %v1569_v0 = vadd.f32 %v1568_v1, %v1567_v6  ;;  %1862 = vmatpush.msrb.mxu1 %v1847_v58  ;;  %v1566_v41 = vadd.f32 %v1565_v9, %v1564_v7  ;;  %v1843_v1 = vld [vmem:[#allocation10 + $0x30] sm:$0xff] }
 0x1cc   :  { %v1463_v48 = vadd.f32 %v2785_v57, %v1445_v23  ;;  %v1544_v23 = vrot.slane %v1543_v36, 1  ;;  %v1552_v6 = vadd.f32 %v1551_v2, %v1550_v4  ;;  %v1806_v4 = vpop.f32.mrf.mxu2 }
 0x1cd   :  { %v1570_v12 = vrot.slane %v1569_v0, 2  ;;  %1863 = vmatpush.msrb.mxu1 %v1846_v18  ;;  %v1606_v15 = vmul.f32 0.2, %v1566_v41 }
 0x1ce   :  { %v1479_v14 = vmax.f32 %v1463_v48, 0.0  ;;  %v686_v56 = vpop.f32.mrf.mxu3  ;;  %v1545_v24 = vadd.f32 %v1544_v23, %v1543_v36 }
 0x1cf   :  { %v733_v19 = vpop.f32.mrf.mxu0  ;;  %v1351_v42 = vrot.slane %v686_v56, 2  ;;  %v1571_v44 = vadd.f32 %v1570_v12, %v1569_v0  ;;  %1864 = vmatpush.msrb.mxu1 %v1845_v63  ;;  %v1839_v12 = vld [vmem:[#allocation10 + $0x10] sm:$0xff]  ;;  %v1786_v36 = vpop.f32.mrf.mxu1 }
 0x1d0   :  { %v1574_v29 = vsel %vm1482_vm10, %v1479_v14, 0.0  ;;  %v1414_v16 = vrot.slane %v733_v19, 3 }
 0x1d1   :  { %v1575_v39 = vrot.slane %v1574_v29, 4  ;;  %v1383_v13 = vadd.f32 %v1351_v42, %v1319_v40  ;;  %v1572_v30 = vrot.slane %v1571_v44, 1  ;;  %1865 = vmatpush.msrb.mxu1 %v1844_v60  ;;  %v1841_v40 = vld [vmem:[#allocation10 + $0x20] sm:$0xff] }
 0x1d2   :  { %v1446_v49 = vadd.f32 %v1414_v16, %v1382_v32 }
 0x1d3   :  { %v1576_v22 = vadd.f32 %v1575_v39, %v1574_v29  ;;  %v1573_v25 = vadd.f32 %v1572_v30, %v1571_v44  ;;  %v1604_v29 = vmul.f32 0.2, %v1552_v6  ;;  %1866 = vmatpush.msrb.mxu1 %v1843_v1 }
 0x1d4   :  { %v1464_v35 = vadd.f32 %v2785_v57, %v1446_v49  ;;  %v1603_v49 = vmul.f32 0.2, %v1545_v24 }
 0x1d5   :  { %v1577_v17 = vrot.slane %v1576_v22, 2  ;;  %v1607_v10 = vmul.f32 0.2, %v1573_v25  ;;  %1867 = vmatpush.msrb.mxu1 %v1842_v54 }
 0x1d6   :  { %v1480_v28 = vmax.f32 %v1464_v35, 0.0  ;;  %v1705_v35 = vsel %vm1627_vm2, %v1604_v29, %v1603_v49 }
 0x1d7   :  { %v735_v47 = vpop.f32.mrf.mxu0  ;;  %v1578_v52 = vadd.f32 %v1577_v17, %v1576_v22  ;;  %1868 = vmatpush.msrb.mxu1 %v1841_v40 }
 0x1d8   :  { %v1581_v33 = vsel %vm1482_vm10, %v1480_v28, 0.0  ;;  %v1415_v26 = vrot.slane %v735_v47, 3 }
 0x1d9   :  { %v1582_v55 = vrot.slane %v1581_v33, 4  ;;  %v1579_v31 = vrot.slane %v1578_v52, 1  ;;  %1869 = vmatpush.msrb.mxu1 %v1840_v43 }
 0x1da   :  { %v1447_v50 = vadd.f32 %v1415_v26, %v1383_v13  ;;  %v1838_v13 = vld [vmem:[#allocation10 + $0x8] sm:$0xff] }
 0x1db   :  { %v1583_v59 = vadd.f32 %v1582_v55, %v1581_v33  ;;  %v1580_v20 = vadd.f32 %v1579_v31, %v1578_v52  ;;  %1870 = vmatpush.msrb.mxu1 %v1839_v12  ;;  %v1837_v33 = vld [vmem:[#allocation10] sm:$0xff]  ;;  %v2142_v26 = vld [vmem:[%s2875_s4] ss:$0 sm:$0xff]  ;;  %s2319_s4 = smov [#allocation11]  }
 0x1dc   :  { %v1465_v34 = vadd.f32 %v2785_v57, %v1447_v50  ;;  %v1559_v57 = vadd.f32 %v1558_v3, %v1557_v51  ;;  %v1784_v17 = vadd.f32 %v2142_v26, %v1783_v37  ;;  %v2143_v52 = vld [vmem:[%s2877_s6] ss:$0 sm:$0xff]  ;;  %s1904_s6 = sshll.u32 %s2319_s4, 4  ;;  %s1905_s6 = int_to_ptr.vmem [resolvable:$true] %s1904_s6 }
 0x1dd   :  { %v1584_v11 = vrot.slane %v1583_v59, 2  ;;  %v1608_v42 = vmul.f32 0.2, %v1580_v20  ;;  %1871 = vmatpush.msrb.mxu1 %v1838_v13 }
 0x1de   :  { %v1481_v8 = vmax.f32 %v1465_v34, 0.0  ;;  %v1605_v39 = vmul.f32 0.2, %v1559_v57  ;;  %v1807_v55 = vadd.f32 %v1806_v4, %v1784_v17 }
 0x1df   :  { %v1585_v61 = vadd.f32 %v1584_v11, %v1583_v59  ;;  %1872 = vmatpush.msrb.mxu1 %v1837_v33  ;;  %v1787_v59 = vadd.f32 %v2142_v26, %v1786_v36 }
 0x1e0   :  { %v1588_v48 = vsel %vm1482_vm10, %v1481_v8, 0.0  ;;  %v1706_v62 = vsel %vm1629_vm3, %v1605_v39, %v1705_v35 }
 0x1e1   :  { %v1589_v32 = vrot.slane %v1588_v48, 4  ;;  %v1586_v14 = vrot.slane %v1585_v61, 1  ;;  %v1707_v45 = vsel %vm1631_vm4, %v1606_v15, %v1706_v62 }
 0x1e2   :  { %v1708_v28 = vsel %vm1633_vm5, %v1607_v10, %v1707_v45 }
 0x1e3   :  { %v1590_v19 = vadd.f32 %v1589_v32, %v1588_v48  ;;  %v1587_v56 = vadd.f32 %v1586_v14, %v1585_v61  ;;  %v1709_v46 = vsel %vm1635_vm6, %v1608_v42, %v1708_v28 }
 0x1e5   :  { %v1591_v16 = vrot.slane %v1590_v19, 2  ;;  %v1609_v5 = vmul.f32 0.2, %v1587_v56 }
 0x1e7   :  { %v1592_v21 = vadd.f32 %v1591_v16, %v1590_v19  ;;  %v1710_v53 = vsel %vm1637_vm8, %v1609_v5, %v1709_v46 }
 0x1e9   :  { %v1593_v0 = vrot.slane %v1592_v21, 1 }
 0x1eb   :  { %v1594_v22 = vadd.f32 %v1593_v0, %v1592_v21 }
 0x1ed   :  { %v1610_v38 = vmul.f32 0.2, %v1594_v22 }
 0x1ef   :  { %v1711_v47 = vsel %vm1639_vm9, %v1610_v38, %v1710_v53 }
 0x1f0   :  { %1831 = vmatmul.f32.gmra.mxu3 %v1711_v47 }
 0x1f3   :  { %v1809_v7 = vpop.f32.mrf.mxu2 }
 0x1f4   :  { %v1810_v44 = vadd.f32 %v1809_v7, %v1787_v59 }
 0x233   :  { %v1829_v51 = vpop.f32.mrf.mxu3 }
 0x234   :  { %v1830_v50 = vadd.f32 %v1829_v51, %v1807_v55 }
 0x236   :  { %v1835_v27 = vmax.f32 %v1830_v50, 0.0 }
 0x238   :  { %1873 = vmatmul.f32.vlgmr.msrb.gmra.mxu1 %v1835_v27 }
 0x273   :  { %v1832_v34 = vpop.f32.mrf.mxu3 }
 0x274   :  { %v1833_v58 = vadd.f32 %v1832_v34, %v1810_v44 }
 0x276   :  { %v1836_v2 = vmax.f32 %v1833_v58, 0.0 }
 0x278   :  { %1876 = vmatmul.f32.gmra.mxu1 %v1836_v2 }
 0x2b5   :  { %v1874_v11 = vpop.f32.mrf.mxu1 }
 0x2b6   :  { %v1875_v3 = vadd.f32 %v2143_v52, %v1874_v11 }
 0x2b8   :  { %1880 = vmax.xlane.f32.xlu0 %v1875_v3 }
 0x2f5   :  { %v1877_v8 = vpop.f32.mrf.mxu1 }
 0x2f6   :  { %v1878_v18 = vadd.f32 %v2143_v52, %v1877_v8 }
 0x2f8   :  { %1882 = vmax.xlane.f32.xlu0 %v1878_v18 }
 0x32b   :  { %v1881_v23 = vpop.xlane.xlu0 %1880 }
 0x32c   :  { %v1884_v9 = vsub.f32 %v1875_v3, %v1881_v23 }
 0x32e   :  { %v1886_v61 = vmul.f32 1.442695, %v1884_v9 }
 0x330   :  { %2144 = vpow2.f32 %v1886_v61 }
 0x336   :  { %v2145_v30 = vpop.eup %2144 }
 0x337   :  { %1890 = vadd.xlane.f32.xlu1 %v2145_v30 }
 0x36b   :  { %v1883_v48 = vpop.xlane.xlu0 %1882 }
 0x36c   :  { %v1885_v63 = vsub.f32 %v1878_v18, %v1883_v48 }
 0x36e   :  { %v1888_v6 = vmul.f32 1.442695, %v1885_v63 }
 0x370   :  { %2146 = vpow2.f32 %v1888_v6 }
 0x376   :  { %v2147_v31 = vpop.eup %2146 }
 0x377   :  { %1892 = vadd.xlane.f32.xlu1 %v2147_v31 }
 0x3aa   :  { %v1891_v32 = vpop.xlane.xlu1 %1890 }
 0x3ab   :  { %2148 = vrcp.f32 %v1891_v32 }
 0x3b1   :  { %v2149_v57 = vpop.eup %2148 }
 0x3b2   :  { %v1896_v14 = vmul.f32 %v2149_v57, %v2145_v30 }
 0x3b4   :  { %1898 = vst [vmem:[#allocation11] sm:$0xff] %v1896_v14 }
 0x3ea   :  { %v1893_v60 = vpop.xlane.xlu1 %1892 }
 0x3eb   :  { %2150 = vrcp.f32 %v1893_v60 }
 0x3f1   :  { %v2151_v24 = vpop.eup %2150 }
 0x3f2   :  { %v1897_v41 = vmul.f32 %v2151_v24, %v2147_v31 }
 0x3f4   :  { %1899 = vst [vmem:[#allocation11 + $0x8] sm:$0xff] %v1897_v41 }
 0x3f5   :  { %1912 = dma.vmem_to_hbm [thread:$0]  %s1905_s6, 256, %s1907_s10, [#allocation4], %s2312_s13, %s2312_s13, %s2313_s14  }
 0x3f6   :  { %2306 = dma.done.wait [#allocation4], 256  }
 0x3f7   :  { %2307 = vsyncadd [#allocation4], 4294967040 }
 0x3f8   :  { %1917 = vsyncpa [#allocation3], 1 }
 0x3f9   :  { %1918 = vsyncpa [#allocation6], 1 }
 0x3fa   :  { %1919 = vsyncpa [#allocation9], 1 }
 0x3fb   :  { %1920 = vsyncpa [#allocation4], 1 }

</bundles_post_ra>
